<compile_context>
chip_gen: v6e
topology: v6e:2x2x1
jax: 0.10.0
libtpu: 0.0.40
codegen_flags: <defaults>
</compile_context>

<pallas_src>
import functools

import jax
import jax.numpy as jnp
from jax.experimental import pallas as pl
from jax.experimental.pallas import tpu as pltpu

IN_FEATURES = 456
HIDDEN = 400
OUT_CLS = 10


def _softplus(s):
    # Stable softplus: log1p(exp(s)) without overflow for large s.
    return jnp.maximum(s, 0.0) + jnp.log1p(jnp.exp(-jnp.abs(s)))


def _round_up(v, m):
    return (v + m - 1) // m * m


def _net_kernel(x_ref, mu1_ref, var1_ref, mu3_ref, var3_ref,
                z1_ref, z2_ref, out_ref):
    # x streamed as bf16; squares formed in bf16 (MXU operands are bf16 anyway).
    x_bf = x_ref[...]                                    # (tile_n, 456) bf16
    x2_bf = x_bf * x_bf

    # ---- fc1: Lrpmlinear(456, 400), local reparameterization trick ----
    gamma1 = jnp.dot(x_bf, mu1_ref[...], preferred_element_type=jnp.float32)
    delta1 = jnp.dot(x2_bf, var1_ref[...], preferred_element_type=jnp.float32)
    z1 = z1_ref[...].astype(jnp.float32)                 # streamed bf16 noise
    h = jnp.maximum(gamma1 + jnp.sqrt(delta1) * z1, 0.0)  # ReLU

    h_bf = h.astype(jnp.bfloat16)
    h2_bf = h_bf * h_bf

    # ---- fc3: Lrpmlinear(400, out_cls) ----
    gamma2 = jnp.dot(h_bf, mu3_ref[...], preferred_element_type=jnp.float32)
    delta2 = jnp.dot(h2_bf, var3_ref[...], preferred_element_type=jnp.float32)
    z2 = z2_ref[...]                                      # (tile_n, 10) f32
    o = jnp.maximum(gamma2 + jnp.sqrt(delta2) * z2, 0.0)  # ReLU (as in reference)

    # ---- Softmax over the class dim (dim=1, as nn.Softmax() resolves for 2-D) ----
    m = jnp.max(o, axis=-1, keepdims=True)
    e = jnp.exp(o - m)
    out_ref[...] = e / jnp.sum(e, axis=-1, keepdims=True)


@functools.partial(jax.jit, static_argnames=("tile_n",))
def net_forward(x, mu1, sigma1, mu3, sigma3, key, *, tile_n=1024):
    n = x.shape[0]

    # Hoisted once per call (not once per grid step): var = softplus(sigma)^2.
    # Note: bf16 cast of the variance injects ~0.4% relative error (accepted).
    var1 = jnp.square(_softplus(sigma1))
    var3 = jnp.square(_softplus(sigma3))

    # bf16 MXU operands (halves weight DMA; f32 accumulation in the dots).
    mu1_b = mu1.astype(jnp.bfloat16)
    var1_b = var1.astype(jnp.bfloat16)
    mu3_b = mu3.astype(jnp.bfloat16)
    var3_b = var3.astype(jnp.bfloat16)

    # Stream x as bf16: halves the largest streamed input.
    x_bf = x.astype(jnp.bfloat16)

    # Reparameterization noise (torch.randn equivalent), drawn host-side and
    # streamed per tile.  fc1 noise is the big one -> bf16; fc3 noise is tiny.
    k1, k2 = jax.random.split(key)
    z1 = jax.random.normal(k1, (n, HIDDEN), dtype=jnp.float32).astype(jnp.bfloat16)
    z2 = jax.random.normal(k2, (n, OUT_CLS), dtype=jnp.float32)

    # Tile policy: big tiles to amortize per-step overhead, but keep >= 2 grid
    # steps when the batch allows (v7x megacore split), rows rounded to 8.
    half = _round_up(max(-(-n // 2), 1), 8)
    tile = max(8, min(tile_n, half, _round_up(n, 8)))
    grid = (pl.cdiv(n, tile),)

    return pl.pallas_call(
        _net_kernel,
        out_shape=jax.ShapeDtypeStruct((n, OUT_CLS), jnp.float32),
        grid_spec=pltpu.PrefetchScalarGridSpec(
            num_scalar_prefetch=0,
            grid=grid,
            in_specs=[
                # x streams per batch tile (auto double-buffered).
                pl.BlockSpec((tile, IN_FEATURES), lambda i: (i, 0)),
                # Weights: constant index_map -> VMEM-resident across tiles.
                pl.BlockSpec((IN_FEATURES, HIDDEN), lambda i: (0, 0)),
                pl.BlockSpec((IN_FEATURES, HIDDEN), lambda i: (0, 0)),
                pl.BlockSpec((HIDDEN, OUT_CLS), lambda i: (0, 0)),
                pl.BlockSpec((HIDDEN, OUT_CLS), lambda i: (0, 0)),
                # Noise streams per batch tile.
                pl.BlockSpec((tile, HIDDEN), lambda i: (i, 0)),
                pl.BlockSpec((tile, OUT_CLS), lambda i: (i, 0)),
            ],
            out_specs=pl.BlockSpec((tile, OUT_CLS), lambda i: (i, 0)),
        ),
        compiler_params=pltpu.CompilerParams(
            dimension_semantics=("parallel",),
            vmem_limit_bytes=48 * 1024 * 1024,
        ),
    )(x_bf, mu1_b, var1_b, mu3_b, var3_b, z1, z2)


if __name__ == "__main__":
    key = jax.random.PRNGKey(0)
    k_x, k_noise = jax.random.split(key)

    batch = 8
    x = jax.random.normal(k_x, (batch, IN_FEATURES), dtype=jnp.float32)

    # Deterministic parameter init, matching Lrpmlinear.__init__ (torch.ones).
    mu1 = jnp.ones((IN_FEATURES, HIDDEN), dtype=jnp.float32)
    sigma1 = jnp.ones((IN_FEATURES, HIDDEN), dtype=jnp.float32)
    mu3 = jnp.ones((HIDDEN, OUT_CLS), dtype=jnp.float32)
    sigma3 = jnp.ones((HIDDEN, OUT_CLS), dtype=jnp.float32)

    out = net_forward(x, mu1, sigma1, mu3, sigma3, k_noise)
    jax.block_until_ready(out)

    assert out.shape == (batch, OUT_CLS)
    assert bool(jnp.all(jnp.isfinite(out)))
    # Exact softmax normalization: rows sum to ~1.
    assert bool(jnp.allclose(jnp.sum(out, axis=-1), 1.0, atol=1e-3))
    print("KERNEL_OK")
</pallas_src>

<mosaic_0001>
module attributes {stable_mosaic.version = 11 : i64} {
  func.func @_net_kernel(%arg0: i32, %arg1: memref<8x456xbf16, #tpu.memory_space<vmem>>, %arg2: memref<456x400xbf16, #tpu.memory_space<vmem>>, %arg3: memref<456x400xbf16, #tpu.memory_space<vmem>>, %arg4: memref<400x10xbf16, #tpu.memory_space<vmem>>, %arg5: memref<400x10xbf16, #tpu.memory_space<vmem>>, %arg6: memref<8x400xbf16, #tpu.memory_space<vmem>>, %arg7: memref<8x10xf32, #tpu.memory_space<vmem>>, %arg8: memref<8x10xf32, #tpu.memory_space<vmem>>) attributes {dimension_semantics = [#tpu.dimension_semantics<parallel>], iteration_bounds = array<i64: 1>, scalar_prefetch = 0 : i64, scratch_operands = 0 : i64, tpu.core_type = #tpu.core_type<tc>, window_params = [{transform_indices = @transform_0, window_bounds = array<i64: 8, 456>}, {pipeline_mode = #tpu.pipeline_mode<synchronous>, transform_indices = @transform_1, window_bounds = array<i64: 456, 400>}, {pipeline_mode = #tpu.pipeline_mode<synchronous>, transform_indices = @transform_2, window_bounds = array<i64: 456, 400>}, {pipeline_mode = #tpu.pipeline_mode<synchronous>, transform_indices = @transform_3, window_bounds = array<i64: 400, 10>}, {pipeline_mode = #tpu.pipeline_mode<synchronous>, transform_indices = @transform_4, window_bounds = array<i64: 400, 10>}, {transform_indices = @transform_5, window_bounds = array<i64: 8, 400>}, {transform_indices = @transform_6, window_bounds = array<i64: 8, 10>}, {transform_indices = @transform_7, window_bounds = array<i64: 8, 10>}]} {
    %c0 = arith.constant 0 : index
    %c0_0 = arith.constant 0 : index
    %0 = vector.load %arg1[%c0, %c0_0] : memref<8x456xbf16, #tpu.memory_space<vmem>>, vector<8x456xbf16>
    %1 = arith.mulf %0, %0 : vector<8x456xbf16>
    %c0_1 = arith.constant 0 : index
    %c0_2 = arith.constant 0 : index
    %2 = vector.load %arg2[%c0_1, %c0_2] : memref<456x400xbf16, #tpu.memory_space<vmem>>, vector<456x400xbf16>
    %cst = arith.constant dense<0.000000e+00> : vector<8x400xf32>
    %3 = tpu.matmul %0, %2, %cst {dimension_numbers = #tpu.dot_dimension_numbers<[1], [0], [0], [1], [0, 0, 1, 1], [], []>} : vector<8x456xbf16>, vector<456x400xbf16>, vector<8x400xf32> -> vector<8x400xf32>
    %c0_3 = arith.constant 0 : index
    %c0_4 = arith.constant 0 : index
    %4 = vector.load %arg3[%c0_3, %c0_4] : memref<456x400xbf16, #tpu.memory_space<vmem>>, vector<456x400xbf16>
    %cst_5 = arith.constant dense<0.000000e+00> : vector<8x400xf32>
    %5 = tpu.matmul %1, %4, %cst_5 {dimension_numbers = #tpu.dot_dimension_numbers<[1], [0], [0], [1], [0, 0, 1, 1], [], []>} : vector<8x456xbf16>, vector<456x400xbf16>, vector<8x400xf32> -> vector<8x400xf32>
    %c0_6 = arith.constant 0 : index
    %c0_7 = arith.constant 0 : index
    %6 = vector.load %arg6[%c0_6, %c0_7] : memref<8x400xbf16, #tpu.memory_space<vmem>>, vector<8x400xbf16>
    %7 = arith.extf %6 : vector<8x400xbf16> to vector<8x400xf32>
    %8 = math.sqrt %5 : vector<8x400xf32>
    %9 = arith.mulf %8, %7 : vector<8x400xf32>
    %10 = arith.addf %3, %9 : vector<8x400xf32>
    %cst_8 = arith.constant 0.000000e+00 : f32
    %11 = vector.broadcast %cst_8 : f32 to vector<8x400xf32>
    %12 = arith.maximumf %10, %11 : vector<8x400xf32>
    %13 = arith.truncf %12 : vector<8x400xf32> to vector<8x400xbf16>
    %14 = arith.mulf %13, %13 : vector<8x400xbf16>
    %c0_9 = arith.constant 0 : index
    %c0_10 = arith.constant 0 : index
    %15 = vector.load %arg4[%c0_9, %c0_10] : memref<400x10xbf16, #tpu.memory_space<vmem>>, vector<400x10xbf16>
    %cst_11 = arith.constant dense<0.000000e+00> : vector<8x10xf32>
    %16 = tpu.matmul %13, %15, %cst_11 {dimension_numbers = #tpu.dot_dimension_numbers<[1], [0], [0], [1], [0, 0, 1, 1], [], []>} : vector<8x400xbf16>, vector<400x10xbf16>, vector<8x10xf32> -> vector<8x10xf32>
    %c0_12 = arith.constant 0 : index
    %c0_13 = arith.constant 0 : index
    %17 = vector.load %arg5[%c0_12, %c0_13] : memref<400x10xbf16, #tpu.memory_space<vmem>>, vector<400x10xbf16>
    %cst_14 = arith.constant dense<0.000000e+00> : vector<8x10xf32>
    %18 = tpu.matmul %14, %17, %cst_14 {dimension_numbers = #tpu.dot_dimension_numbers<[1], [0], [0], [1], [0, 0, 1, 1], [], []>} : vector<8x400xbf16>, vector<400x10xbf16>, vector<8x10xf32> -> vector<8x10xf32>
    %c0_15 = arith.constant 0 : index
    %c0_16 = arith.constant 0 : index
    %19 = vector.load %arg7[%c0_15, %c0_16] : memref<8x10xf32, #tpu.memory_space<vmem>>, vector<8x10xf32>
    %20 = math.sqrt %18 : vector<8x10xf32>
    %21 = arith.mulf %20, %19 : vector<8x10xf32>
    %22 = arith.addf %16, %21 : vector<8x10xf32>
    %cst_17 = arith.constant 0.000000e+00 : f32
    %23 = vector.broadcast %cst_17 : f32 to vector<8x10xf32>
    %24 = arith.maximumf %22, %23 : vector<8x10xf32>
    %cst_18 = arith.constant dense<0xFF800000> : vector<8xf32>
    %25 = vector.multi_reduction <maximumf>, %24, %cst_18 [1] : vector<8x10xf32> to vector<8xf32>
    %26 = vector.shape_cast %25 : vector<8xf32> to vector<8x1xf32>
    %27 = vector.broadcast %26 : vector<8x1xf32> to vector<8x10xf32>
    %28 = arith.subf %24, %27 : vector<8x10xf32>
    %29 = math.exp %28 : vector<8x10xf32>
    %cst_19 = arith.constant dense<0.000000e+00> : vector<8xf32>
    %30 = vector.multi_reduction <add>, %29, %cst_19 [1] : vector<8x10xf32> to vector<8xf32>
    %31 = vector.shape_cast %30 : vector<8xf32> to vector<8x1xf32>
    %32 = vector.broadcast %31 : vector<8x1xf32> to vector<8x10xf32>
    %33 = arith.divf %29, %32 : vector<8x10xf32>
    %c0_20 = arith.constant 0 : index
    %c0_21 = arith.constant 0 : index
    %34 = vector.load %arg8[%c0_20, %c0_21] : memref<8x10xf32, #tpu.memory_space<vmem>>, vector<8x10xf32>
    tpu.vector_store %arg8[%c0_20, %c0_21], %33 {strides = array<i32>} : memref<8x10xf32, #tpu.memory_space<vmem>>, vector<8x10xf32>,
    return
  }
  func.func @transform_0(%arg0: i32) -> (i32, i32) {
    %c0_i32 = arith.constant 0 : i32
    %c0_i32_0 = arith.constant 0 : i32
    return %arg0, %c0_i32 : i32, i32
  }
  func.func @transform_1(%arg0: i32) -> (i32, i32) {
    %c0_i32 = arith.constant 0 : i32
    %c0_i32_0 = arith.constant 0 : i32
    %c0_i32_1 = arith.constant 0 : i32
    return %c0_i32, %c0_i32_0 : i32, i32
  }
  func.func @transform_2(%arg0: i32) -> (i32, i32) {
    %c0_i32 = arith.constant 0 : i32
    %c0_i32_0 = arith.constant 0 : i32
    %c0_i32_1 = arith.constant 0 : i32
    return %c0_i32, %c0_i32_0 : i32, i32
  }
  func.func @transform_3(%arg0: i32) -> (i32, i32) {
    %c0_i32 = arith.constant 0 : i32
    %c0_i32_0 = arith.constant 0 : i32
    %c0_i32_1 = arith.constant 0 : i32
    return %c0_i32, %c0_i32_0 : i32, i32
  }
  func.func @transform_4(%arg0: i32) -> (i32, i32) {
    %c0_i32 = arith.constant 0 : i32
    %c0_i32_0 = arith.constant 0 : i32
    %c0_i32_1 = arith.constant 0 : i32
    return %c0_i32, %c0_i32_0 : i32, i32
  }
  func.func @transform_5(%arg0: i32) -> (i32, i32) {
    %c0_i32 = arith.constant 0 : i32
    %c0_i32_0 = arith.constant 0 : i32
    return %arg0, %c0_i32 : i32, i32
  }
  func.func @transform_6(%arg0: i32) -> (i32, i32) {
    %c0_i32 = arith.constant 0 : i32
    %c0_i32_0 = arith.constant 0 : i32
    return %arg0, %c0_i32 : i32, i32
  }
  func.func @transform_7(%arg0: i32) -> (i32, i32) {
    %c0_i32 = arith.constant 0 : i32
    %c0_i32_0 = arith.constant 0 : i32
    return %arg0, %c0_i32 : i32, i32
  }
}

</mosaic_0001>

<bundles_post_ra>
// kernel: net_forward.3
= control target key start
LH: loop header
LB: loop body
LE: loop exit
PB: predicated region body
PF: predicated region fallthrough
CT: control target
= control target key end

     0   :  { %vm847_vm0 = vcmask 1043456   ;;  %vm843_vm1 = vcmask 588800   ;;  %s4225_s0 = inlined_call_operand.vmem [shape: bf16[8,456], index: 0, kind: input, shape index: {}]   ;;  %s4226_s1 = inlined_call_operand.vmem [shape: bf16[456,400], index: 1, kind: input, shape index: {}]   ;;  %s4227_s2 = inlined_call_operand.vmem [shape: bf16[456,400], index: 2, kind: input, shape index: {}]   ;;  %s4228_s3 = inlined_call_operand.vmem [shape: bf16[400,10], index: 3, kind: input, shape index: {}]   ;;  %s4229_s4 = inlined_call_operand.vmem [shape: bf16[400,10], index: 4, kind: input, shape index: {}]   ;;  %s4230_s5 = inlined_call_operand.vmem [shape: bf16[8,400], index: 5, kind: input, shape index: {}]   ;;  %s4231_s6 = inlined_call_operand.vmem [shape: f32[8,10], index: 6, kind: input, shape index: {}]   ;;  %s4232_s7 = inlined_call_operand.hbm [shape: f32[8,10], index: 7, kind: output, shape index: {}]  }
   0x1   :  { %v2786_v0 = vld [vmem:[%s4227_s2 + $0xe4] ss:$16 sps:$4 sm:$0xff]   ;;  %v2790_v2 = vld [vmem:[%s4227_s2 + $0xe0] ss:$16 sps:$4 sm:$0xff]   ;;  %v3379_v40 = vld [vmem:[%s4225_s0 + $0x8] sm:$0xff] }
   0x2   :  { %v2788_v1 = vld [vmem:[%s4227_s2 + $0x2e4] ss:$16 sps:$4 sm:$0xff]   ;;  %860 = vmatprep.subr.bf16.mxu0 %v2786_v0  ;;  %v2791_v3 = vld [vmem:[%s4227_s2 + $0x2e0] ss:$16 sps:$4 sm:$0xff]   ;;  %v31_v41 = vmul.bf16 %v3379_v40, %v3379_v40  ;;  %v2867_v61 = vld [vmem:[%s4227_s2 + $0xec] ss:$16 sps:$4 sm:$0xff]  }
   0x3   :  { %901 = vmatprep.subr.bf16.mxu1 %v2788_v1  ;;  %v2792_v4 = vld [vmem:[%s4227_s2 + $0xc4] ss:$16 sps:$4 sm:$0xff]   ;;  %861 = vmatpush1.bf16.msra.mxu0 %v2790_v2  ;;  %v2796_v6 = vld [vmem:[%s4227_s2 + $0xc0] ss:$16 sps:$4 sm:$0xff]   ;;  %v2865_v63 = vld [vmem:[%s4227_s2 + $0xe8] ss:$16 sps:$4 sm:$0xff]  }
   0x4   :  { %902 = vmatpush1.bf16.msra.mxu1 %v2791_v3  ;;  %v2794_v5 = vld [vmem:[%s4227_s2 + $0x2c4] ss:$16 sps:$4 sm:$0xff]   ;;  %862 = vmatprep.subr.bf16.mxu0 %v2792_v4  ;;  %v2797_v7 = vld [vmem:[%s4227_s2 + $0x2c0] ss:$16 sps:$4 sm:$0xff]   ;;  %v3392_v45 = vcombine.high %v31_v41, %v31_v41  ;;  %v3442_v62 = vcombine.low %v31_v41, %v31_v41  ;;  %v2873_v2 = vld [vmem:[%s4227_s2 + $0xcc] ss:$16 sps:$4 sm:$0xff]  }
   0x5   :  { %903 = vmatprep.subr.bf16.mxu1 %v2794_v5  ;;  %v2798_v8 = vld [vmem:[%s4227_s2 + $0xa4] ss:$16 sps:$4 sm:$0xff]   ;;  %v2802_v10 = vld [vmem:[%s4227_s2 + $0xa0] ss:$16 sps:$4 sm:$0xff]   ;;  %v2871_v3 = vld [vmem:[%s4227_s2 + $0xc8] ss:$16 sps:$4 sm:$0xff]  }
   0x6   :  { %v2800_v9 = vld [vmem:[%s4227_s2 + $0x2a4] ss:$16 sps:$4 sm:$0xff]   ;;  %v2803_v11 = vld [vmem:[%s4227_s2 + $0x2a0] ss:$16 sps:$4 sm:$0xff]   ;;  %2561 = vmatprep.mubr.msk.bf16.mxu1 %vm843_vm1, %v3392_v45  ;;  %v259_v41 = vld [vmem:[%s4227_s2 + $0x388] sm:$0xff] }
   0x7   :  { %863 = vmatpush1.bf16.msra.mxu0 %v2796_v6  ;;  %v2804_v12 = vld [vmem:[%s4227_s2 + $0x84] ss:$16 sps:$4 sm:$0xff]   ;;  %v2808_v14 = vld [vmem:[%s4227_s2 + $0x80] ss:$16 sps:$4 sm:$0xff]   ;;  %v2879_v6 = vld [vmem:[%s4227_s2 + $0xac] ss:$16 sps:$4 sm:$0xff]  }
   0x8   :  { %904 = vmatpush1.bf16.msra.mxu1 %v2797_v7  ;;  %864 = vmatprep.subr.bf16.mxu0 %v2798_v8  ;;  %v2806_v13 = vld [vmem:[%s4227_s2 + $0x284] ss:$16 sps:$4 sm:$0xff]   ;;  %v2809_v15 = vld [vmem:[%s4227_s2 + $0x280] ss:$16 sps:$4 sm:$0xff]   ;;  %v2877_v7 = vld [vmem:[%s4227_s2 + $0xa8] ss:$16 sps:$4 sm:$0xff]  }
   0x9   :  { %905 = vmatprep.subr.bf16.mxu1 %v2800_v9  ;;  %v2810_v16 = vld [vmem:[%s4227_s2 + $0x64] ss:$16 sps:$4 sm:$0xff]   ;;  %v2814_v18 = vld [vmem:[%s4227_s2 + $0x60] ss:$16 sps:$4 sm:$0xff]   ;;  %v2883_v9 = vld [vmem:[%s4227_s2 + $0x8c] ss:$16 sps:$4 sm:$0xff]  }
   0xa   :  { %v2812_v17 = vld [vmem:[%s4227_s2 + $0x264] ss:$16 sps:$4 sm:$0xff]   ;;  %v2815_v19 = vld [vmem:[%s4227_s2 + $0x260] ss:$16 sps:$4 sm:$0xff]  }
   0xb   :  { %865 = vmatpush1.bf16.msra.mxu0 %v2802_v10  ;;  %v2816_v20 = vld [vmem:[%s4227_s2 + $0x44] ss:$16 sps:$4 sm:$0xff]   ;;  %v2820_v22 = vld [vmem:[%s4227_s2 + $0x40] ss:$16 sps:$4 sm:$0xff]   ;;  %v2886_v10 = vld [vmem:[%s4227_s2 + $0x2ec] ss:$16 sps:$4 sm:$0xff]  }
   0xc   :  { %906 = vmatpush1.bf16.msra.mxu1 %v2803_v11  ;;  %866 = vmatprep.subr.bf16.mxu0 %v2804_v12  ;;  %v2818_v21 = vld [vmem:[%s4227_s2 + $0x244] ss:$16 sps:$4 sm:$0xff]   ;;  %v2821_v23 = vld [vmem:[%s4227_s2 + $0x240] ss:$16 sps:$4 sm:$0xff]   ;;  %v2881_v12 = vld [vmem:[%s4227_s2 + $0x88] ss:$16 sps:$4 sm:$0xff]  }
   0xd   :  { %907 = vmatprep.subr.bf16.mxu1 %v2806_v13  ;;  %v2822_v24 = vld [vmem:[%s4227_s2 + $0x24] ss:$16 sps:$4 sm:$0xff]   ;;  %v2826_v26 = vld [vmem:[%s4227_s2 + $0x20] ss:$16 sps:$4 sm:$0xff]   ;;  %v2884_v13 = vld [vmem:[%s4227_s2 + $0x2e8] ss:$16 sps:$4 sm:$0xff]  }
   0xe   :  { %v2824_v25 = vld [vmem:[%s4227_s2 + $0x224] ss:$16 sps:$4 sm:$0xff]   ;;  %v2827_v27 = vld [vmem:[%s4227_s2 + $0x220] ss:$16 sps:$4 sm:$0xff]  }
   0xf   :  { %867 = vmatpush1.bf16.msra.mxu0 %v2808_v14  ;;  %v2828_v28 = vld [vmem:[%s4227_s2 + $0x4] ss:$16 sps:$4 sm:$0xff]   ;;  %v2832_v31 = vld [vmem:[%s4227_s2] ss:$16 sps:$4 sm:$0xff]   ;;  %v2889_v14 = vld [vmem:[%s4227_s2 + $0x6c] ss:$16 sps:$4 sm:$0xff]  }
  0x10   :  { %908 = vmatpush1.bf16.msra.mxu1 %v2809_v15  ;;  %868 = vmatprep.subr.bf16.mxu0 %v2810_v16  ;;  %v2830_v29 = vld [vmem:[%s4227_s2 + $0x204] ss:$16 sps:$4 sm:$0xff]   ;;  %v2833_v32 = vld [vmem:[%s4227_s2 + $0x200] ss:$16 sps:$4 sm:$0xff]   ;;  %v2892_v15 = vld [vmem:[%s4227_s2 + $0x2cc] ss:$16 sps:$4 sm:$0xff]  }
  0x11   :  { %909 = vmatprep.subr.bf16.mxu1 %v2812_v17  ;;  %v258_v30 = vld [vmem:[%s4227_s2 + $0x380] sm:$0xff]  ;;  %v2887_v16 = vld [vmem:[%s4227_s2 + $0x68] ss:$16 sps:$4 sm:$0xff]  }
  0x12   :  { %v2834_v33 = vld [vmem:[%s4227_s2 + $0x1e4] ss:$16 sps:$4 sm:$0xff]   ;;  %v2557_v34 = vcombine.high %v258_v30, %v258_v30  ;;  %v2556_v35 = vcombine.low %v258_v30, %v258_v30  ;;  %v2837_v36 = vld [vmem:[%s4227_s2 + $0x1e0] ss:$16 sps:$4 sm:$0xff]   ;;  %v2890_v17 = vld [vmem:[%s4227_s2 + $0x2c8] ss:$16 sps:$4 sm:$0xff]  }
  0x13   :  { %869 = vmatpush1.bf16.msra.mxu0 %v2814_v18  ;;  %v2839_v38 = vld [vmem:[%s4227_s2 + $0x1c4] ss:$16 sps:$4 sm:$0xff]   ;;  %v2843_v42 = vld [vmem:[%s4227_s2 + $0x1c0] ss:$16 sps:$4 sm:$0xff]   ;;  %v2895_v18 = vld [vmem:[%s4227_s2 + $0x4c] ss:$16 sps:$4 sm:$0xff]  }
  0x14   :  { %910 = vmatpush1.bf16.msra.mxu1 %v2815_v19  ;;  %870 = vmatprep.subr.bf16.mxu0 %v2816_v20  ;;  %v849_v37 = vsel %vm847_vm0, %v2556_v35, 0  ;;  %v2841_v39 = vld [vmem:[%s4227_s2 + $0x364] ss:$16 sps:$4 sm:$0xff]   ;;  %v2844_v43 = vld [vmem:[%s4227_s2 + $0x360] ss:$16 sps:$4 sm:$0xff]  }
  0x15   :  { %911 = vmatprep.subr.bf16.mxu1 %v2818_v21  ;;  %v2845_v44 = vld [vmem:[%s4227_s2 + $0x1a4] ss:$16 sps:$4 sm:$0xff]   ;;  %v2849_v47 = vld [vmem:[%s4227_s2 + $0x1a0] ss:$16 sps:$4 sm:$0xff]   ;;  %v2898_v19 = vld [vmem:[%s4227_s2 + $0x2ac] ss:$16 sps:$4 sm:$0xff]  }
  0x16   :  { %v2847_v46 = vld [vmem:[%s4227_s2 + $0x344] ss:$16 sps:$4 sm:$0xff]   ;;  %v2850_v48 = vld [vmem:[%s4227_s2 + $0x340] ss:$16 sps:$4 sm:$0xff]   ;;  %v2893_v20 = vld [vmem:[%s4227_s2 + $0x48] ss:$16 sps:$4 sm:$0xff]  }
  0x17   :  { %871 = vmatpush1.bf16.msra.mxu0 %v2820_v22  ;;  %v2851_v49 = vld [vmem:[%s4227_s2 + $0x184] ss:$16 sps:$4 sm:$0xff]   ;;  %v2855_v52 = vld [vmem:[%s4227_s2 + $0x180] ss:$16 sps:$4 sm:$0xff]   ;;  %v2896_v21 = vld [vmem:[%s4227_s2 + $0x2a8] ss:$16 sps:$4 sm:$0xff]  }
  0x18   :  { %912 = vmatpush1.bf16.msra.mxu1 %v2821_v23  ;;  %872 = vmatprep.subr.bf16.mxu0 %v2822_v24  ;;  %v2853_v50 = vld [vmem:[%s4227_s2 + $0x324] ss:$16 sps:$4 sm:$0xff]   ;;  %v2856_v54 = vld [vmem:[%s4227_s2 + $0x320] ss:$16 sps:$4 sm:$0xff]   ;;  %v2901_v22 = vld [vmem:[%s4227_s2 + $0x2c] ss:$16 sps:$4 sm:$0xff]  }
  0x19   :  { %913 = vmatprep.subr.bf16.mxu1 %v2824_v25  ;;  %v3414_v51 = vld [vmem:[%s4225_s0] sm:$0xff]  ;;  %v2904_v23 = vld [vmem:[%s4227_s2 + $0x28c] ss:$16 sps:$4 sm:$0xff]   ;;  %v2899_v24 = vld [vmem:[%s4227_s2 + $0x28] ss:$16 sps:$4 sm:$0xff]  }
  0x1a   :  { %v30_v53 = vmul.bf16 %v3414_v51, %v3414_v51  ;;  %v2857_v55 = vld [vmem:[%s4227_s2 + $0x164] ss:$16 sps:$4 sm:$0xff]   ;;  %v2861_v58 = vld [vmem:[%s4227_s2 + $0x160] ss:$16 sps:$4 sm:$0xff]   ;;  %v2902_v25 = vld [vmem:[%s4227_s2 + $0x288] ss:$16 sps:$4 sm:$0xff]  }
  0x1b   :  { %873 = vmatpush1.bf16.msra.mxu0 %v2826_v26  ;;  %v2859_v56 = vld [vmem:[%s4227_s2 + $0x304] ss:$16 sps:$4 sm:$0xff]   ;;  %v2862_v59 = vld [vmem:[%s4227_s2 + $0x300] ss:$16 sps:$4 sm:$0xff]   ;;  %v2907_v26 = vld [vmem:[%s4227_s2 + $0xc] ss:$16 sps:$4 sm:$0xff]  }
  0x1c   :  { %914 = vmatpush1.bf16.msra.mxu1 %v2827_v27  ;;  %874 = vmatprep.subr.bf16.mxu0 %v2828_v28  ;;  %v2441_v57 = vcombine.high %v30_v53, %v30_v53  ;;  %v2863_v60 = vld [vmem:[%s4227_s2 + $0x144] ss:$16 sps:$4 sm:$0xff]   ;;  %v2868_v0 = vld [vmem:[%s4227_s2 + $0x140] ss:$16 sps:$4 sm:$0xff]   ;;  %v3481_v11 = vcombine.low %v30_v53, %v30_v53  ;;  %v2910_v27 = vld [vmem:[%s4227_s2 + $0x26c] ss:$16 sps:$4 sm:$0xff]  }
  0x1d   :  { %915 = vmatprep.subr.bf16.mxu1 %v2830_v29  ;;  %v2869_v1 = vld [vmem:[%s4227_s2 + $0x124] ss:$16 sps:$4 sm:$0xff]   ;;  %v2874_v4 = vld [vmem:[%s4227_s2 + $0x120] ss:$16 sps:$4 sm:$0xff]   ;;  %v2905_v28 = vld [vmem:[%s4227_s2 + $0x8] ss:$16 sps:$4 sm:$0xff]  }
  0x1e   :  { %892 = vmatprep.mubr.bf16.mxu0 %v2441_v57  ;;  %v2875_v5 = vld [vmem:[%s4227_s2 + $0x104] ss:$16 sps:$4 sm:$0xff]   ;;  %v2880_v8 = vld [vmem:[%s4227_s2 + $0x100] ss:$16 sps:$4 sm:$0xff]   ;;  %v2908_v29 = vld [vmem:[%s4227_s2 + $0x268] ss:$16 sps:$4 sm:$0xff]  }
  0x1f   :  { %875 = vmatpush1.bf16.msra.mxu0 %v2832_v31  ;;  %v2913_v30 = vld [vmem:[%s4227_s2 + $0x1ec] ss:$16 sps:$4 sm:$0xff]   ;;  %v2937_v53 = vld [vmem:[%s4227_s2 + $0x368] ss:$16 sps:$4 sm:$0xff]  }
  0x20   :  { %916 = vmatpush1.bf16.msra.mxu1 %v2833_v32  ;;  %876 = vmatprep.subr.bf16.mxu0 %v2834_v33  ;;  %v2916_v31 = vld [vmem:[%s4227_s2 + $0x24c] ss:$16 sps:$4 sm:$0xff]   ;;  %v2911_v32 = vld [vmem:[%s4227_s2 + $0x1e8] ss:$16 sps:$4 sm:$0xff]  }
  0x21   :  { %2560 = vmatprep.subr.msk.bf16.mxu1 %vm847_vm0, %v2557_v34  ;;  %v2914_v33 = vld [vmem:[%s4227_s2 + $0x248] ss:$16 sps:$4 sm:$0xff]   ;;  %v2919_v34 = vld [vmem:[%s4227_s2 + $0x1cc] ss:$16 sps:$4 sm:$0xff]  }
  0x22   :  { %v2922_v35 = vld [vmem:[%s4227_s2 + $0x22c] ss:$16 sps:$4 sm:$0xff]  }
  0x23   :  { %877 = vmatpush2.bf16.msra.mxu0 %v2837_v36  ;;  %v2917_v36 = vld [vmem:[%s4227_s2 + $0x1c8] ss:$16 sps:$4 sm:$0xff]  }
  0x24   :  { %924 = vmatpush2.bf16.msra.mxu1 %v849_v37  ;;  %878 = vmatprep.subr.bf16.mxu0 %v2839_v38  ;;  %v2920_v37 = vld [vmem:[%s4227_s2 + $0x228] ss:$16 sps:$4 sm:$0xff]   ;;  %v2925_v38 = vld [vmem:[%s4227_s2 + $0x1ac] ss:$16 sps:$4 sm:$0xff]  }
  0x25   :  { %925 = vmatprep.subr.bf16.mxu1 %v2841_v39  ;;  %v2928_v39 = vld [vmem:[%s4227_s2 + $0x20c] ss:$16 sps:$4 sm:$0xff]  }
  0x27   :  { %879 = vmatpush2.bf16.msra.mxu0 %v2843_v42  ;;  %v2923_v42 = vld [vmem:[%s4227_s2 + $0x1a8] ss:$16 sps:$4 sm:$0xff]  }
  0x28   :  { %926 = vmatpush2.bf16.msra.mxu1 %v2844_v43  ;;  %880 = vmatprep.subr.bf16.mxu0 %v2845_v44  ;;  %v2926_v43 = vld [vmem:[%s4227_s2 + $0x208] ss:$16 sps:$4 sm:$0xff]   ;;  %v2931_v44 = vld [vmem:[%s4227_s2 + $0x18c] ss:$16 sps:$4 sm:$0xff]  }
  0x29   :  { %927 = vmatprep.subr.bf16.mxu1 %v2847_v46  ;;  %v2558_v46 = vcombine.low %v259_v41, %v259_v41 }
  0x2b   :  { %881 = vmatpush2.bf16.msra.mxu0 %v2849_v47  ;;  %v2929_v47 = vld [vmem:[%s4227_s2 + $0x188] ss:$16 sps:$4 sm:$0xff]  }
  0x2c   :  { %928 = vmatpush2.bf16.msra.mxu1 %v2850_v48  ;;  %882 = vmatprep.subr.bf16.mxu0 %v2851_v49  ;;  %v2936_v48 = vld [vmem:[%s4227_s2 + $0x16c] ss:$16 sps:$4 sm:$0xff]   ;;  %v855_v49 = vsel %vm847_vm0, %v2558_v46, 0  ;;  %v3019_v46 = vld [vmem:[%s4226_s1 + $0x1a4] ss:$16 sps:$4 sm:$0xff]  }
  0x2d   :  { %929 = vmatprep.subr.bf16.mxu1 %v2853_v50  ;;  %v2939_v50 = vld [vmem:[%s4227_s2 + $0x36c] ss:$16 sps:$4 sm:$0xff]  }
  0x2f   :  { %883 = vmatpush2.bf16.msra.mxu0 %v2855_v52  ;;  %v2934_v52 = vld [vmem:[%s4227_s2 + $0x168] ss:$16 sps:$4 sm:$0xff]  }
  0x30   :  { %930 = vmatpush2.bf16.msra.mxu1 %v2856_v54  ;;  %884 = vmatprep.subr.bf16.mxu0 %v2857_v55  ;;  %v2942_v54 = vld [vmem:[%s4227_s2 + $0x14c] ss:$16 sps:$4 sm:$0xff]  }
  0x31   :  { %931 = vmatprep.subr.bf16.mxu1 %v2859_v56  ;;  %v2945_v55 = vld [vmem:[%s4227_s2 + $0x34c] ss:$16 sps:$4 sm:$0xff]   ;;  %v2940_v56 = vld [vmem:[%s4227_s2 + $0x148] ss:$16 sps:$4 sm:$0xff]  }
  0x33   :  { %885 = vmatpush2.bf16.msra.mxu0 %v2861_v58  ;;  %v2948_v58 = vld [vmem:[%s4227_s2 + $0x12c] ss:$16 sps:$4 sm:$0xff]  }
  0x34   :  { %932 = vmatpush2.bf16.msra.mxu1 %v2862_v59  ;;  %886 = vmatprep.subr.bf16.mxu0 %v2863_v60  ;;  %v2951_v59 = vld [vmem:[%s4227_s2 + $0x32c] ss:$16 sps:$4 sm:$0xff]   ;;  %v2946_v60 = vld [vmem:[%s4227_s2 + $0x128] ss:$16 sps:$4 sm:$0xff]  }
  0x35   :  { %942 = vmatprep.subr.bf16.mxu1 %v2867_v61  ;;  %v2949_v61 = vld [vmem:[%s4227_s2 + $0x328] ss:$16 sps:$4 sm:$0xff]  }
  0x37   :  { %934 = vmatmul.mubr.bf16.vlgmr.msra.gmra.mxu1 %v3442_v62  ;;  %887 = vmatpush2.bf16.msra.mxu0 %v2868_v0  ;;  %v2957_v0 = vld [vmem:[%s4227_s2 + $0x30c] ss:$16 sps:$4 sm:$0xff]  }
  0x38   :  { %943 = vmatpush1.bf16.msra.mxu1 %v2865_v63  ;;  %888 = vmatprep.subr.bf16.mxu0 %v2869_v1  ;;  %v2954_v63 = vld [vmem:[%s4227_s2 + $0x10c] ss:$16 sps:$4 sm:$0xff]   ;;  %v2952_v1 = vld [vmem:[%s4227_s2 + $0x108] ss:$16 sps:$4 sm:$0xff]  }
  0x39   :  { %944 = vmatprep.subr.bf16.mxu1 %v2873_v2  ;;  %974 = vmatprep.mubr.bf16.mxu1 %v2441_v57  ;;  %v2943_v57 = vld [vmem:[%s4227_s2 + $0x348] ss:$16 sps:$4 sm:$0xff]  }
  0x3a   :  { %v2955_v2 = vld [vmem:[%s4227_s2 + $0x308] ss:$16 sps:$4 sm:$0xff]  }
  0x3b   :  { %889 = vmatpush2.bf16.msra.mxu0 %v2874_v4  ;;  %v2963_v4 = vld [vmem:[%s4226_s1 + $0x2e4] ss:$16 sps:$4 sm:$0xff]  }
  0x3c   :  { %945 = vmatpush1.bf16.msra.mxu1 %v2871_v3  ;;  %890 = vmatprep.subr.bf16.mxu0 %v2875_v5  ;;  %v2960_v3 = vld [vmem:[%s4226_s1 + $0xe4] ss:$16 sps:$4 sm:$0xff]   ;;  %v2958_v5 = vld [vmem:[%s4226_s1 + $0xe0] ss:$16 sps:$4 sm:$0xff]  }
  0x3d   :  { %946 = vmatprep.subr.bf16.mxu1 %v2879_v6  ;;  %v2961_v6 = vld [vmem:[%s4226_s1 + $0x2e0] ss:$16 sps:$4 sm:$0xff]  }
  0x3f   :  { %891 = vmatpush2.bf16.msra.mxu0 %v2880_v8  ;;  %v2969_v8 = vld [vmem:[%s4226_s1 + $0x2c4] ss:$16 sps:$4 sm:$0xff]  }
  0x40   :  { %947 = vmatpush1.bf16.msra.mxu1 %v2877_v7  ;;  %983 = vmatprep.subr.bf16.mxu0 %v2886_v10  ;;  %v2966_v7 = vld [vmem:[%s4226_s1 + $0xc4] ss:$16 sps:$4 sm:$0xff]   ;;  %v3659_v10 = vcombine.high %v3414_v51, %v3414_v51 }
  0x41   :  { %948 = vmatprep.subr.bf16.mxu1 %v2883_v9  ;;  %v3655_v9 = vcombine.high %v3379_v40, %v3379_v40  ;;  %v2972_v51 = vld [vmem:[%s4226_s1 + $0xa4] ss:$16 sps:$4 sm:$0xff]  }
  0x42   :  { %893 = vmatmul.mubr.bf16.vlgmr.msra.gmra.mxu0 %v3481_v11 }
  0x43   :  { %984 = vmatpush1.bf16.msra.mxu0 %v2884_v13  ;;  %2563 = vmatprep.mubr.msk.bf16.mxu0 %vm843_vm1, %v3392_v45  ;;  %v2559_v45 = vcombine.high %v259_v41, %v259_v41  ;;  %v2967_v13 = vld [vmem:[%s4226_s1 + $0x2c0] ss:$16 sps:$4 sm:$0xff]  }
  0x44   :  { %949 = vmatpush1.bf16.msra.mxu1 %v2881_v12  ;;  %985 = vmatprep.subr.bf16.mxu0 %v2892_v15  ;;  %v2964_v12 = vld [vmem:[%s4226_s1 + $0xc0] ss:$16 sps:$4 sm:$0xff]   ;;  %v2978_v15 = vld [vmem:[%s4226_s1 + $0x84] ss:$16 sps:$4 sm:$0xff]  }
  0x45   :  { %950 = vmatprep.subr.bf16.mxu1 %v2889_v14  ;;  %v2973_v14 = vld [vmem:[%s4226_s1 + $0x2a0] ss:$16 sps:$4 sm:$0xff]  }
  0x47   :  { %986 = vmatpush1.bf16.msra.mxu0 %v2890_v17  ;;  %v2976_v17 = vld [vmem:[%s4226_s1 + $0x80] ss:$16 sps:$4 sm:$0xff]  }
  0x48   :  { %951 = vmatpush1.bf16.msra.mxu1 %v2887_v16  ;;  %987 = vmatprep.subr.bf16.mxu0 %v2898_v19  ;;  %v2981_v16 = vld [vmem:[%s4226_s1 + $0x284] ss:$16 sps:$4 sm:$0xff]  }
  0x49   :  { %952 = vmatprep.subr.bf16.mxu1 %v2895_v18  ;;  %v2979_v18 = vld [vmem:[%s4226_s1 + $0x280] ss:$16 sps:$4 sm:$0xff]   ;;  %v2984_v19 = vld [vmem:[%s4226_s1 + $0x64] ss:$16 sps:$4 sm:$0xff]  }
  0x4b   :  { %988 = vmatpush1.bf16.msra.mxu0 %v2896_v21  ;;  %v2982_v21 = vld [vmem:[%s4226_s1 + $0x60] ss:$16 sps:$4 sm:$0xff]  }
  0x4c   :  { %953 = vmatpush1.bf16.msra.mxu1 %v2893_v20  ;;  %989 = vmatprep.subr.bf16.mxu0 %v2904_v23  ;;  %v2987_v20 = vld [vmem:[%s4226_s1 + $0x264] ss:$16 sps:$4 sm:$0xff]  }
  0x4d   :  { %954 = vmatprep.subr.bf16.mxu1 %v2901_v22  ;;  %v2985_v22 = vld [vmem:[%s4226_s1 + $0x260] ss:$16 sps:$4 sm:$0xff]   ;;  %v2990_v23 = vld [vmem:[%s4226_s1 + $0x44] ss:$16 sps:$4 sm:$0xff]  }
  0x4f   :  { %990 = vmatpush1.bf16.msra.mxu0 %v2902_v25  ;;  %v2988_v25 = vld [vmem:[%s4226_s1 + $0x40] ss:$16 sps:$4 sm:$0xff]  }
  0x50   :  { %955 = vmatpush1.bf16.msra.mxu1 %v2899_v24  ;;  %991 = vmatprep.subr.bf16.mxu0 %v2910_v27  ;;  %v2993_v24 = vld [vmem:[%s4226_s1 + $0x244] ss:$16 sps:$4 sm:$0xff]  }
  0x51   :  { %956 = vmatprep.subr.bf16.mxu1 %v2907_v26  ;;  %v2991_v26 = vld [vmem:[%s4226_s1 + $0x240] ss:$16 sps:$4 sm:$0xff]   ;;  %v2996_v27 = vld [vmem:[%s4226_s1 + $0x24] ss:$16 sps:$4 sm:$0xff]  }
  0x53   :  { %992 = vmatpush1.bf16.msra.mxu0 %v2908_v29  ;;  %v2994_v29 = vld [vmem:[%s4226_s1 + $0x20] ss:$16 sps:$4 sm:$0xff]  }
  0x54   :  { %957 = vmatpush1.bf16.msra.mxu1 %v2905_v28  ;;  %993 = vmatprep.subr.bf16.mxu0 %v2916_v31  ;;  %v2999_v28 = vld [vmem:[%s4226_s1 + $0x224] ss:$16 sps:$4 sm:$0xff]  }
  0x55   :  { %958 = vmatprep.subr.bf16.mxu1 %v2913_v30  ;;  %v2997_v30 = vld [vmem:[%s4226_s1 + $0x220] ss:$16 sps:$4 sm:$0xff]   ;;  %v3002_v31 = vld [vmem:[%s4226_s1 + $0x4] ss:$16 sps:$4 sm:$0xff]  }
  0x57   :  { %994 = vmatpush1.bf16.msra.mxu0 %v2914_v33  ;;  %v144_v33 = vld [vmem:[%s4226_s1 + $0x380] sm:$0xff] }
  0x58   :  { %959 = vmatpush2.bf16.msra.mxu1 %v2911_v32  ;;  %995 = vmatprep.subr.bf16.mxu0 %v2922_v35  ;;  %v3005_v32 = vld [vmem:[%s4226_s1 + $0x204] ss:$16 sps:$4 sm:$0xff]   ;;  %v3003_v35 = vld [vmem:[%s4226_s1 + $0x200] ss:$16 sps:$4 sm:$0xff]  }
  0x59   :  { %960 = vmatprep.subr.bf16.mxu1 %v2919_v34  ;;  %v3000_v34 = vld [vmem:[%s4226_s1] ss:$16 sps:$4 sm:$0xff]  }
  0x5b   :  { %996 = vmatpush1.bf16.msra.mxu0 %v2920_v37  ;;  %v2681_v37 = vcombine.high %v144_v33, %v144_v33 }
  0x5c   :  { %961 = vmatpush2.bf16.msra.mxu1 %v2917_v36  ;;  %997 = vmatprep.subr.bf16.mxu0 %v2928_v39  ;;  %v3008_v36 = vld [vmem:[%s4226_s1 + $0x1e4] ss:$16 sps:$4 sm:$0xff]   ;;  %v3006_v39 = vld [vmem:[%s4226_s1 + $0x1e0] ss:$16 sps:$4 sm:$0xff]  }
  0x5d   :  { %962 = vmatprep.subr.bf16.mxu1 %v2925_v38  ;;  %v2680_v38 = vcombine.low %v144_v33, %v144_v33 }
  0x5f   :  { %998 = vmatpush1.bf16.msra.mxu0 %v2926_v43  ;;  %v1649_v41 = vsel %vm847_vm0, %v2680_v38, 0  ;;  %v3016_v43 = vld [vmem:[%s4226_s1 + $0x364] ss:$16 sps:$4 sm:$0xff]  }
  0x60   :  { %963 = vmatpush2.bf16.msra.mxu1 %v2923_v42  ;;  %2562 = vmatprep.subr.msk.bf16.mxu0 %vm847_vm0, %v2559_v45  ;;  %v3013_v42 = vld [vmem:[%s4226_s1 + $0x1c4] ss:$16 sps:$4 sm:$0xff]   ;;  %v3014_v45 = vld [vmem:[%s4226_s1 + $0x360] ss:$16 sps:$4 sm:$0xff]  }
  0x61   :  { %964 = vmatprep.subr.bf16.mxu1 %v2931_v44  ;;  %v3011_v44 = vld [vmem:[%s4226_s1 + $0x1c0] ss:$16 sps:$4 sm:$0xff]  }
  0x63   :  { %1006 = vmatpush2.bf16.msra.mxu0 %v855_v49  ;;  %v3020_v49 = vld [vmem:[%s4226_s1 + $0x340] ss:$16 sps:$4 sm:$0xff]  }
  0x64   :  { %965 = vmatpush2.bf16.msra.mxu1 %v2929_v47  ;;  %1007 = vmatprep.subr.bf16.mxu0 %v2939_v50  ;;  %v3022_v47 = vld [vmem:[%s4226_s1 + $0x344] ss:$16 sps:$4 sm:$0xff]  }
  0x65   :  { %966 = vmatprep.subr.bf16.mxu1 %v2936_v48  ;;  %v3017_v48 = vld [vmem:[%s4226_s1 + $0x1a0] ss:$16 sps:$4 sm:$0xff]   ;;  %v3025_v50 = vld [vmem:[%s4226_s1 + $0x184] ss:$16 sps:$4 sm:$0xff]  }
  0x67   :  { %1008 = vmatpush2.bf16.msra.mxu0 %v2937_v53  ;;  %v3023_v53 = vld [vmem:[%s4226_s1 + $0x180] ss:$16 sps:$4 sm:$0xff]  }
  0x68   :  { %967 = vmatpush2.bf16.msra.mxu1 %v2934_v52  ;;  %1009 = vmatprep.subr.bf16.mxu0 %v2945_v55  ;;  %v3028_v52 = vld [vmem:[%s4226_s1 + $0x324] ss:$16 sps:$4 sm:$0xff]  }
  0x69   :  { %968 = vmatprep.subr.bf16.mxu1 %v2942_v54  ;;  %v3026_v54 = vld [vmem:[%s4226_s1 + $0x320] ss:$16 sps:$4 sm:$0xff]   ;;  %v3031_v55 = vld [vmem:[%s4226_s1 + $0x164] ss:$16 sps:$4 sm:$0xff]  }
  0x6b   :  { %1010 = vmatpush2.bf16.msra.mxu0 %v2943_v57  ;;  %v3029_v57 = vld [vmem:[%s4226_s1 + $0x160] ss:$16 sps:$4 sm:$0xff]  }
  0x6c   :  { %969 = vmatpush2.bf16.msra.mxu1 %v2940_v56  ;;  %1011 = vmatprep.subr.bf16.mxu0 %v2951_v59  ;;  %v3034_v56 = vld [vmem:[%s4226_s1 + $0x304] ss:$16 sps:$4 sm:$0xff]  }
  0x6d   :  { %970 = vmatprep.subr.bf16.mxu1 %v2948_v58  ;;  %v3032_v58 = vld [vmem:[%s4226_s1 + $0x300] ss:$16 sps:$4 sm:$0xff]   ;;  %v3038_v59 = vld [vmem:[%s4226_s1 + $0x144] ss:$16 sps:$4 sm:$0xff]  }
  0x6f   :  { %1012 = vmatpush2.bf16.msra.mxu0 %v2949_v61  ;;  %v3036_v61 = vld [vmem:[%s4226_s1 + $0x140] ss:$16 sps:$4 sm:$0xff]  }
  0x70   :  { %971 = vmatpush2.bf16.msra.mxu1 %v2946_v60  ;;  %1013 = vmatprep.subr.bf16.mxu0 %v2957_v0  ;;  %v3042_v60 = vld [vmem:[%s4226_s1 + $0xec] ss:$16 sps:$4 sm:$0xff]   ;;  %v3817_v0 = vcombine.low %v3379_v40, %v3379_v40  ;;  %v3046_v40 = vld [vmem:[%s4226_s1 + $0xc8] ss:$16 sps:$4 sm:$0xff]  }
  0x71   :  { %972 = vmatprep.subr.bf16.mxu1 %v2954_v63  ;;  %v3040_v63 = vld [vmem:[%s4226_s1 + $0xe8] ss:$16 sps:$4 sm:$0xff]  }
  0x73   :  { %1014 = vmatpush2.bf16.msra.mxu0 %v2955_v2  ;;  %v3048_v2 = vld [vmem:[%s4226_s1 + $0xcc] ss:$16 sps:$4 sm:$0xff]  }
  0x74   :  { %973 = vmatpush2.bf16.msra.mxu1 %v2952_v1  ;;  %1660 = vmatprep.subr.bf16.mxu0 %v2960_v3  ;;  %v3045_v1 = vld [vmem:[%s4226_s1 + $0x124] ss:$16 sps:$4 sm:$0xff]   ;;  %v3043_v3 = vld [vmem:[%s4226_s1 + $0x120] ss:$16 sps:$4 sm:$0xff]  }
  0x75   :  { %1701 = vmatprep.subr.bf16.mxu1 %v2963_v4  ;;  %v3051_v4 = vld [vmem:[%s4226_s1 + $0x104] ss:$16 sps:$4 sm:$0xff]  }
  0x76   :  { %1016 = vmatmul.mubr.bf16.vlgmr.msra.gmra.mxu0 %v3442_v62  ;;  %v2975_v62 = vld [vmem:[%s4226_s1 + $0x2a4] ss:$16 sps:$4 sm:$0xff]  }
  0x77   :  { %975 = vmatmul.mubr.bf16.vlgmr.msra.gmra.mxu1 %v3481_v11  ;;  %1661 = vmatpush1.bf16.msra.mxu0 %v2958_v5  ;;  %v2970_v11 = vld [vmem:[%s4226_s1 + $0xa0] ss:$16 sps:$4 sm:$0xff]   ;;  %v3054_v5 = vld [vmem:[%s4226_s1 + $0xac] ss:$16 sps:$4 sm:$0xff]  }
  0x78   :  { %1702 = vmatpush1.bf16.msra.mxu1 %v2961_v6  ;;  %1662 = vmatprep.subr.bf16.mxu0 %v2966_v7  ;;  %v3049_v6 = vld [vmem:[%s4226_s1 + $0x100] ss:$16 sps:$4 sm:$0xff]   ;;  %v3052_v7 = vld [vmem:[%s4226_s1 + $0xa8] ss:$16 sps:$4 sm:$0xff]  }
  0x79   :  { %1703 = vmatprep.subr.bf16.mxu1 %v2969_v8  ;;  %2685 = vmatprep.mubr.msk.bf16.mxu1 %vm843_vm1, %v3655_v9  ;;  %v3059_v8 = vld [vmem:[%s4226_s1 + $0x8c] ss:$16 sps:$4 sm:$0xff]  }
  0x7a   :  { %1692 = vmatprep.mubr.bf16.mxu0 %v3659_v10 }
  0x7b   :  { %1663 = vmatpush1.bf16.msra.mxu0 %v2964_v12  ;;  %v3062_v12 = vld [vmem:[%s4226_s1 + $0x2ec] ss:$16 sps:$4 sm:$0xff]  }
  0x7c   :  { %1704 = vmatpush1.bf16.msra.mxu1 %v2967_v13  ;;  %1664 = vmatprep.subr.bf16.mxu0 %v2972_v51  ;;  %v3057_v13 = vld [vmem:[%s4226_s1 + $0x88] ss:$16 sps:$4 sm:$0xff]   ;;  %v3198_v51 = vld [vmem:[%s4225_s0] sm:$0xff] }
  0x7d   :  { %1705 = vmatprep.subr.bf16.mxu1 %v2975_v62  ;;  %v3860_v62 = vcombine.low %v3198_v51, %v3198_v51 }
  0x7f   :  { %1665 = vmatpush1.bf16.msra.mxu0 %v2970_v11  ;;  %v3065_v11 = vld [vmem:[%s4226_s1 + $0x6c] ss:$16 sps:$4 sm:$0xff]  }
  0x80   :  { %1706 = vmatpush1.bf16.msra.mxu1 %v2973_v14  ;;  %1666 = vmatprep.subr.bf16.mxu0 %v2978_v15  ;;  %v3068_v14 = vld [vmem:[%s4226_s1 + $0x2cc] ss:$16 sps:$4 sm:$0xff]   ;;  %v3063_v15 = vld [vmem:[%s4226_s1 + $0x68] ss:$16 sps:$4 sm:$0xff]  }
  0x81   :  { %1707 = vmatprep.subr.bf16.mxu1 %v2981_v16  ;;  %v3066_v16 = vld [vmem:[%s4226_s1 + $0x2c8] ss:$16 sps:$4 sm:$0xff]  }
  0x83   :  { %1667 = vmatpush1.bf16.msra.mxu0 %v2976_v17  ;;  %v3071_v17 = vld [vmem:[%s4226_s1 + $0x4c] ss:$16 sps:$4 sm:$0xff]  }
  0x84   :  { %1708 = vmatpush1.bf16.msra.mxu1 %v2979_v18  ;;  %1668 = vmatprep.subr.bf16.mxu0 %v2984_v19  ;;  %v3074_v18 = vld [vmem:[%s4226_s1 + $0x2ac] ss:$16 sps:$4 sm:$0xff]  }
  0x85   :  { %1709 = vmatprep.subr.bf16.mxu1 %v2987_v20 }
  0x87   :  { %1669 = vmatpush1.bf16.msra.mxu0 %v2982_v21 }
  0x88   :  { %1710 = vmatpush1.bf16.msra.mxu1 %v2985_v22  ;;  %1670 = vmatprep.subr.bf16.mxu0 %v2990_v23 }
  0x89   :  { %1711 = vmatprep.subr.bf16.mxu1 %v2993_v24 }
  0x8b   :  { %1671 = vmatpush1.bf16.msra.mxu0 %v2988_v25 }
  0x8c   :  { %1712 = vmatpush1.bf16.msra.mxu1 %v2991_v26  ;;  %1672 = vmatprep.subr.bf16.mxu0 %v2996_v27 }
  0x8d   :  { %1713 = vmatprep.subr.bf16.mxu1 %v2999_v28 }
  0x8f   :  { %1673 = vmatpush1.bf16.msra.mxu0 %v2994_v29 }
  0x90   :  { %1714 = vmatpush1.bf16.msra.mxu1 %v2997_v30  ;;  %1674 = vmatprep.subr.bf16.mxu0 %v3002_v31 }
  0x91   :  { %1715 = vmatprep.subr.bf16.mxu1 %v3005_v32 }
  0x93   :  { %1675 = vmatpush1.bf16.msra.mxu0 %v3000_v34 }
  0x94   :  { %1716 = vmatpush1.bf16.msra.mxu1 %v3003_v35  ;;  %1676 = vmatprep.subr.bf16.mxu0 %v3008_v36 }
  0x95   :  { %2684 = vmatprep.subr.msk.bf16.mxu1 %vm847_vm0, %v2681_v37 }
  0x97   :  { %1677 = vmatpush2.bf16.msra.mxu0 %v3006_v39 }
  0x98   :  { %1724 = vmatpush2.bf16.msra.mxu1 %v1649_v41  ;;  %1678 = vmatprep.subr.bf16.mxu0 %v3013_v42 }
  0x99   :  { %1725 = vmatprep.subr.bf16.mxu1 %v3016_v43 }
  0x9b   :  { %1679 = vmatpush2.bf16.msra.mxu0 %v3011_v44 }
  0x9c   :  { %1726 = vmatpush2.bf16.msra.mxu1 %v3014_v45  ;;  %1680 = vmatprep.subr.bf16.mxu0 %v3019_v46 }
  0x9d   :  { %1727 = vmatprep.subr.bf16.mxu1 %v3022_v47 }
  0x9f   :  { %1681 = vmatpush2.bf16.msra.mxu0 %v3017_v48 }
  0xa0   :  { %1728 = vmatpush2.bf16.msra.mxu1 %v3020_v49  ;;  %1682 = vmatprep.subr.bf16.mxu0 %v3025_v50 }
  0xa1   :  { %1729 = vmatprep.subr.bf16.mxu1 %v3028_v52 }
  0xa3   :  { %1683 = vmatpush2.bf16.msra.mxu0 %v3023_v53 }
  0xa4   :  { %1730 = vmatpush2.bf16.msra.mxu1 %v3026_v54  ;;  %1684 = vmatprep.subr.bf16.mxu0 %v3031_v55 }
  0xa5   :  { %1731 = vmatprep.subr.bf16.mxu1 %v3034_v56 }
  0xa7   :  { %1685 = vmatpush2.bf16.msra.mxu0 %v3029_v57 }
  0xa8   :  { %1732 = vmatpush2.bf16.msra.mxu1 %v3032_v58  ;;  %1686 = vmatprep.subr.bf16.mxu0 %v3038_v59 }
  0xa9   :  { %1742 = vmatprep.subr.bf16.mxu1 %v3042_v60 }
  0xab   :  { %1734 = vmatmul.mubr.bf16.vlgmr.msra.gmra.mxu1 %v3817_v0  ;;  %1687 = vmatpush2.bf16.msra.mxu0 %v3036_v61 }
  0xac   :  { %1743 = vmatpush1.bf16.msra.mxu1 %v3040_v63  ;;  %1688 = vmatprep.subr.bf16.mxu0 %v3045_v1 }
  0xad   :  { %1744 = vmatprep.subr.bf16.mxu1 %v3048_v2  ;;  %1774 = vmatprep.mubr.bf16.mxu1 %v3659_v10  ;;  %v3060_v10 = vld [vmem:[%s4226_s1 + $0x2e8] ss:$16 sps:$4 sm:$0xff]  }
  0xaf   :  { %1689 = vmatpush2.bf16.msra.mxu0 %v3043_v3 }
  0xb0   :  { %1745 = vmatpush1.bf16.msra.mxu1 %v3046_v40  ;;  %1690 = vmatprep.subr.bf16.mxu0 %v3051_v4 }
  0xb1   :  { %1746 = vmatprep.subr.bf16.mxu1 %v3054_v5 }
  0xb3   :  { %1691 = vmatpush2.bf16.msra.mxu0 %v3049_v6 }
  0xb4   :  { %1747 = vmatpush1.bf16.msra.mxu1 %v3052_v7  ;;  %1783 = vmatprep.subr.bf16.mxu0 %v3062_v12 }
  0xb5   :  { %1748 = vmatprep.subr.bf16.mxu1 %v3059_v8 }
  0xb6   :  { %1693 = vmatmul.mubr.bf16.vlgmr.msra.gmra.mxu0 %v3860_v62 }
  0xb7   :  { %1784 = vmatpush1.bf16.msra.mxu0 %v3060_v10 }
  0xb8   :  { %1749 = vmatpush1.bf16.msra.mxu1 %v3057_v13  ;;  %1785 = vmatprep.subr.bf16.mxu0 %v3068_v14 }
  0xb9   :  { %1750 = vmatprep.subr.bf16.mxu1 %v3065_v11 }
  0xba   :  { %12 = vsyncpa [#allocation3], 0  ;;  %2687 = vmatprep.mubr.msk.bf16.mxu0 %vm843_vm1, %v3655_v9  ;;  %v3069_v19 = vld [vmem:[%s4226_s1 + $0x48] ss:$16 sps:$4 sm:$0xff]   ;;  %v3077_v21 = vld [vmem:[%s4226_s1 + $0x2c] ss:$16 sps:$4 sm:$0xff]  }
  0xbb   :  { %1786 = vmatpush1.bf16.msra.mxu0 %v3066_v16  ;;  %v3072_v20 = vld [vmem:[%s4226_s1 + $0x2a8] ss:$16 sps:$4 sm:$0xff]   ;;  %v3080_v9 = vld [vmem:[%s4226_s1 + $0x28c] ss:$16 sps:$4 sm:$0xff]   ;;  %v3136_v40 = vld [vmem:[%s4229_s4 + $0x70] sm:$0xff]   ;;  %vm2086_vm10 = vcmask 130048  }
  0xbc   :  { %1751 = vmatpush1.bf16.msra.mxu1 %v3063_v15  ;;  %1787 = vmatprep.subr.bf16.mxu0 %v3074_v18  ;;  %v3075_v22 = vld [vmem:[%s4226_s1 + $0x28] ss:$16 sps:$4 sm:$0xff]   ;;  %v3083_v24 = vld [vmem:[%s4226_s1 + $0xc] ss:$16 sps:$4 sm:$0xff]   ;;  %v3137_v4 = vld [vmem:[%s4229_s4 + $0x30] sm:$0xff]   ;;  %vm2413_vm13 = vcmask 80896  }
  0xbd   :  { %1752 = vmatprep.subr.bf16.mxu1 %v3071_v17  ;;  %v3078_v23 = vld [vmem:[%s4226_s1 + $0x288] ss:$16 sps:$4 sm:$0xff]   ;;  %v3086_v25 = vld [vmem:[%s4226_s1 + $0x26c] ss:$16 sps:$4 sm:$0xff]   ;;  %v3141_v7 = vld [vmem:[%s4229_s4 + $0x20] sm:$0xff]  }
  0xbe   :  { %v3081_v26 = vld [vmem:[%s4226_s1 + $0x8] ss:$16 sps:$4 sm:$0xff]   ;;  %v3089_v28 = vld [vmem:[%s4226_s1 + $0x1ec] ss:$16 sps:$4 sm:$0xff]   ;;  %v3144_v51 = vld [vmem:[%s4229_s4 + $0x50] sm:$0xff]  }
  0xbf   :  { %1788 = vmatpush1.bf16.msra.mxu0 %v3072_v20  ;;  %v3084_v27 = vld [vmem:[%s4226_s1 + $0x268] ss:$16 sps:$4 sm:$0xff]   ;;  %v3092_v29 = vld [vmem:[%s4226_s1 + $0x24c] ss:$16 sps:$4 sm:$0xff]   ;;  %v3145_v11 = vld [vmem:[%s4229_s4 + $0x10] sm:$0xff]  }
  0xc0   :  { %1753 = vmatpush1.bf16.msra.mxu1 %v3069_v19  ;;  %1789 = vmatprep.subr.bf16.mxu0 %v3080_v9  ;;  %v3087_v30 = vld [vmem:[%s4226_s1 + $0x1e8] ss:$16 sps:$4 sm:$0xff]   ;;  %v3095_v32 = vld [vmem:[%s4226_s1 + $0x1cc] ss:$16 sps:$4 sm:$0xff]   ;;  %v3148_v17 = vld [vmem:[%s4229_s4 + $0x40] sm:$0xff]  }
  0xc1   :  { %1754 = vmatprep.subr.bf16.mxu1 %v3077_v21  ;;  %v3090_v31 = vld [vmem:[%s4226_s1 + $0x248] ss:$16 sps:$4 sm:$0xff]   ;;  %v3098_v33 = vld [vmem:[%s4226_s1 + $0x22c] ss:$16 sps:$4 sm:$0xff]   ;;  %v3149_v20 = vld [vmem:[%s4229_s4] sm:$0xff]  }
  0xc2   :  { %v3093_v34 = vld [vmem:[%s4226_s1 + $0x1c8] ss:$16 sps:$4 sm:$0xff]   ;;  %v3101_v36 = vld [vmem:[%s4226_s1 + $0x1ac] ss:$16 sps:$4 sm:$0xff]  }
  0xc3   :  { %1790 = vmatpush1.bf16.msra.mxu0 %v3078_v23  ;;  %v3096_v35 = vld [vmem:[%s4226_s1 + $0x228] ss:$16 sps:$4 sm:$0xff]   ;;  %v3104_v37 = vld [vmem:[%s4226_s1 + $0x20c] ss:$16 sps:$4 sm:$0xff]  }
  0xc4   :  { %1755 = vmatpush1.bf16.msra.mxu1 %v3075_v22  ;;  %1791 = vmatprep.subr.bf16.mxu0 %v3086_v25  ;;  %v145_v38 = vld [vmem:[%s4226_s1 + $0x388] sm:$0xff]  ;;  %v3134_v2 = vld [vmem:[%s4229_s4 + $0x78] sm:$0xff]   ;;  %v3221_v25 = vmov 0  }
  0xc5   :  { %1756 = vmatprep.subr.bf16.mxu1 %v3083_v24  ;;  %v3099_v39 = vld [vmem:[%s4226_s1 + $0x1a8] ss:$16 sps:$4 sm:$0xff]   ;;  %v3107_v42 = vld [vmem:[%s4226_s1 + $0x18c] ss:$16 sps:$4 sm:$0xff]   ;;  %v2683_v43 = vcombine.high %v145_v38, %v145_v38  ;;  %v2682_v44 = vcombine.low %v145_v38, %v145_v38 }
  0xc6   :  { %v3102_v41 = vld [vmem:[%s4226_s1 + $0x208] ss:$16 sps:$4 sm:$0xff]   ;;  %v3112_v47 = vld [vmem:[%s4226_s1 + $0x16c] ss:$16 sps:$4 sm:$0xff]  }
  0xc7   :  { %1792 = vmatpush1.bf16.msra.mxu0 %v3084_v27  ;;  %v3105_v45 = vld [vmem:[%s4226_s1 + $0x188] ss:$16 sps:$4 sm:$0xff]   ;;  %v1655_v46 = vsel %vm847_vm0, %v2682_v44, 0  ;;  %v3115_v48 = vld [vmem:[%s4226_s1 + $0x36c] ss:$16 sps:$4 sm:$0xff]   ;;  %v3162_v27 = vld [vmem:[%s4229_s4 + $0xb0] sm:$0xff]  }
  0xc8   :  { %1757 = vmatpush1.bf16.msra.mxu1 %v3081_v26  ;;  %1793 = vmatprep.subr.bf16.mxu0 %v3092_v29  ;;  %v3110_v49 = vld [vmem:[%s4226_s1 + $0x168] ss:$16 sps:$4 sm:$0xff]   ;;  %v3118_v52 = vld [vmem:[%s4226_s1 + $0x14c] ss:$16 sps:$4 sm:$0xff]   ;;  %v3168_v29 = vld [vmem:[%s4229_s4 + $0xa0] sm:$0xff]  }
  0xc9   :  { %1758 = vmatprep.subr.bf16.mxu1 %v3089_v28  ;;  %v3113_v50 = vld [vmem:[%s4226_s1 + $0x368] ss:$16 sps:$4 sm:$0xff]   ;;  %v3121_v53 = vld [vmem:[%s4226_s1 + $0x34c] ss:$16 sps:$4 sm:$0xff]  }
  0xca   :  { %v3116_v54 = vld [vmem:[%s4226_s1 + $0x148] ss:$16 sps:$4 sm:$0xff]   ;;  %v3124_v56 = vld [vmem:[%s4226_s1 + $0x12c] ss:$16 sps:$4 sm:$0xff]  }
  0xcb   :  { %1794 = vmatpush1.bf16.msra.mxu0 %v3090_v31  ;;  %v3119_v55 = vld [vmem:[%s4226_s1 + $0x348] ss:$16 sps:$4 sm:$0xff]   ;;  %v3127_v57 = vld [vmem:[%s4226_s1 + $0x32c] ss:$16 sps:$4 sm:$0xff]   ;;  %v3171_v31 = vld [vmem:[%s4229_s4 + $0x90] sm:$0xff]  }
  0xcc   :  { %1759 = vmatpush2.bf16.msra.mxu1 %v3087_v30  ;;  %1795 = vmatprep.subr.bf16.mxu0 %v3098_v33  ;;  %v3122_v58 = vld [vmem:[%s4226_s1 + $0x128] ss:$16 sps:$4 sm:$0xff]   ;;  %v3130_v60 = vld [vmem:[%s4226_s1 + $0x10c] ss:$16 sps:$4 sm:$0xff]   ;;  %v3173_v33 = vld [vmem:[%s4229_s4 + $0x80] sm:$0xff]  }
  0xcd   :  { %1760 = vmatprep.subr.bf16.mxu1 %v3095_v32  ;;  %v3125_v59 = vld [vmem:[%s4226_s1 + $0x328] ss:$16 sps:$4 sm:$0xff]   ;;  %v3133_v61 = vld [vmem:[%s4226_s1 + $0x30c] ss:$16 sps:$4 sm:$0xff]  }
  0xce   :  { %v3128_v63 = vld [vmem:[%s4226_s1 + $0x108] ss:$16 sps:$4 sm:$0xff]  }
  0xcf   :  { %1796 = vmatpush1.bf16.msra.mxu0 %v3096_v35  ;;  %v3131_v1 = vld [vmem:[%s4226_s1 + $0x308] ss:$16 sps:$4 sm:$0xff]  }
  0xd0   :  { %1761 = vmatpush2.bf16.msra.mxu1 %v3093_v34  ;;  %1797 = vmatprep.subr.bf16.mxu0 %v3104_v37  ;;  %v3135_v3 = vld [vmem:[%s4229_s4 + $0x38] sm:$0xff]   ;;  %v3138_v5 = vld [vmem:[%s4229_s4 + $0x68] sm:$0xff]   ;;  %v3174_v34 = vld [vmem:[%s4229_s4 + $0xc0] sm:$0xff]  }
  0xd1   :  { %1762 = vmatprep.subr.bf16.mxu1 %v3101_v36  ;;  %v3139_v6 = vld [vmem:[%s4229_s4 + $0x28] sm:$0xff]   ;;  %v3142_v8 = vld [vmem:[%s4229_s4 + $0x58] sm:$0xff]  }
  0xd2   :  { %v3143_v13 = vld [vmem:[%s4229_s4 + $0x18] sm:$0xff]   ;;  %v3146_v15 = vld [vmem:[%s4229_s4 + $0x48] sm:$0xff]  }
  0xd3   :  { %1798 = vmatpush1.bf16.msra.mxu0 %v3102_v41  ;;  %v3147_v16 = vld [vmem:[%s4229_s4 + $0x8] sm:$0xff]   ;;  %v3150_v9 = vld [vmem:[%s4228_s3 + $0x78] sm:$0xff]  }
  0xd4   :  { %1763 = vmatpush2.bf16.msra.mxu1 %v3099_v39  ;;  %2686 = vmatprep.subr.msk.bf16.mxu0 %vm847_vm0, %v2683_v43  ;;  %v3159_v26 = vld [vmem:[%s4229_s4 + $0xb8] sm:$0xff]   ;;  %v3165_v28 = vld [vmem:[%s4229_s4 + $0xa8] sm:$0xff]  }
  0xd5   :  { %1764 = vmatprep.subr.bf16.mxu1 %v3107_v42  ;;  %v3170_v30 = vld [vmem:[%s4229_s4 + $0x98] sm:$0xff]   ;;  %v3172_v32 = vld [vmem:[%s4229_s4 + $0x88] sm:$0xff]  }
  0xd7   :  { %1806 = vmatpush2.bf16.msra.mxu0 %v1655_v46 }
  0xd8   :  { %1765 = vmatpush2.bf16.msra.mxu1 %v3105_v45  ;;  %1807 = vmatprep.subr.bf16.mxu0 %v3115_v48 }
  0xd9   :  { %1766 = vmatprep.subr.bf16.mxu1 %v3112_v47 }
  0xdb   :  { %1808 = vmatpush2.bf16.msra.mxu0 %v3113_v50 }
  0xdc   :  { %1767 = vmatpush2.bf16.msra.mxu1 %v3110_v49  ;;  %1809 = vmatprep.subr.bf16.mxu0 %v3121_v53 }
  0xdd   :  { %1768 = vmatprep.subr.bf16.mxu1 %v3118_v52 }
  0xdf   :  { %1810 = vmatpush2.bf16.msra.mxu0 %v3119_v55 }
  0xe0   :  { %1769 = vmatpush2.bf16.msra.mxu1 %v3116_v54  ;;  %1811 = vmatprep.subr.bf16.mxu0 %v3127_v57  ;;  %v1024_v54 = vld [vmem:[%s4230_s5] sm:$0xff] }
  0xe1   :  { %1770 = vmatprep.subr.bf16.mxu1 %v3124_v56 }
  0xe3   :  { %1812 = vmatpush2.bf16.msra.mxu0 %v3125_v59 }
  0xe4   :  { %1771 = vmatpush2.bf16.msra.mxu1 %v3122_v58  ;;  %1813 = vmatprep.subr.bf16.mxu0 %v3133_v61  ;;  %v1026_v58 = vunpack.c.l.bf16 %v1024_v54 }
  0xe5   :  { %1772 = vmatprep.subr.bf16.mxu1 %v3130_v60 }
  0xe7   :  { %1814 = vmatpush2.bf16.msra.mxu0 %v3131_v1 }
  0xe8   :  { %1773 = vmatpush2.bf16.msra.mxu1 %v3128_v63  ;;  %2740 = vmatprep.subr.bf16.mxu0 %v3134_v2  ;;  %v1027_v63 = vunpack.c.h.bf16 %v1024_v54 }
  0xe9   :  { %2130 = vmatprep.subr.bf16.mxu1 %v3221_v25 }
  0xea   :  { %1816 = vmatmul.mubr.bf16.vlgmr.msra.gmra.mxu0 %v3817_v0  ;;  %v3140_v0 = vld [vmem:[%s4229_s4 + $0x60] sm:$0xff]  }
  0xeb   :  { %1775 = vmatmul.mubr.bf16.vlgmr.msra.gmra.mxu1 %v3860_v62  ;;  %2741 = vmatpush3.bf16.msra.mxu0 %v3135_v3 }
  0xec   :  { %2742 = vmatprep.subr.bf16.mxu0 %v3136_v40  ;;  %2131 = vmatpush1.bf16.msra.mxu1 %v3159_v26  ;;  %v3164_v26 = vld [vmem:[%s4228_s3 + $0x48] sm:$0xff]  }
  0xed   :  { %2132 = vmatprep.subr.bf16.mxu1 %v3221_v25 }
  0xef   :  { %2743 = vmatpush3.bf16.msra.mxu0 %v3137_v4 }
  0xf0   :  { %2744 = vmatprep.subr.bf16.mxu0 %v3138_v5  ;;  %2133 = vmatpush1.bf16.msra.mxu1 %v3162_v27  ;;  %v3166_v27 = vld [vmem:[%s4228_s3 + $0x8] sm:$0xff]  }
  0xf1   :  { %2134 = vmatprep.subr.bf16.mxu1 %v3221_v25 }
  0xf3   :  { %2745 = vmatpush3.bf16.msra.mxu0 %v3139_v6 }
  0xf4   :  { %2746 = vmatprep.subr.bf16.mxu0 %v3140_v0  ;;  %2135 = vmatpush1.bf16.msra.mxu1 %v3165_v28  ;;  %v3167_v28 = vld [vmem:[%s4228_s3 + $0x40] sm:$0xff]  }
  0xf5   :  { %2136 = vmatprep.subr.bf16.mxu1 %v3221_v25 }
  0xf7   :  { %v935_v12 = vpop.f32.mrf.mxu1  ;;  %2747 = vmatpush3.bf16.msra.mxu0 %v3141_v7 }
  0xf8   :  { %2748 = vmatprep.subr.bf16.mxu0 %v3142_v8  ;;  %2137 = vmatpush1.bf16.msra.mxu1 %v3168_v29 }
  0xf9   :  { %v937_v10 = vpop.f32.mrf.mxu1  ;;  %2138 = vmatprep.subr.bf16.mxu1 %v3221_v25 }
  0xfb   :  { %v939_v62 = vpop.f32.mrf.mxu1  ;;  %2749 = vmatpush3.bf16.msra.mxu0 %v3143_v13 }
  0xfc   :  { %2750 = vmatprep.subr.bf16.mxu0 %v3144_v51  ;;  %2139 = vmatpush1.bf16.msra.mxu1 %v3170_v30  ;;  %v3169_v30 = vld [vmem:[%s4228_s3] sm:$0xff]  }
  0xfd   :  { %v940_v14 = vpop.f32.mrf.mxu1  ;;  %2140 = vmatprep.subr.bf16.mxu1 %v3221_v25 }
  0xfe   :  { %v3151_v14 = vld [vmem:[%s4228_s3 + $0x38] sm:$0xff]  }
  0xff   :  { %2751 = vmatpush3.bf16.msra.mxu0 %v3145_v11 }
 0x100   :  { %2752 = vmatprep.subr.bf16.mxu0 %v3146_v15  ;;  %2141 = vmatpush1.bf16.msra.mxu1 %v3171_v31 }
 0x101   :  { %2142 = vmatprep.subr.bf16.mxu1 %v3221_v25 }
 0x102   :  { %v894_v18 = vpop.f32.mrf.mxu0 }
 0x103   :  { %v4055_v19 = vadd.f32 %v935_v12, %v894_v18  ;;  %2753 = vmatpush3.bf16.msra.mxu0 %v3147_v16  ;;  %v3152_v16 = vld [vmem:[%s4228_s3 + $0x70] sm:$0xff]   ;;  %v3154_v18 = vld [vmem:[%s4228_s3 + $0x68] sm:$0xff]  }
 0x104   :  { %v896_v21 = vpop.f32.mrf.mxu0  ;;  %2754 = vmatprep.subr.bf16.mxu0 %v3148_v17  ;;  %2143 = vmatpush1.bf16.msra.mxu1 %v3172_v32  ;;  %v3153_v17 = vld [vmem:[%s4228_s3 + $0x30] sm:$0xff]  }
 0x105   :  { %v4063_v22 = vadd.f32 %v937_v10, %v896_v21  ;;  %2144 = vmatprep.subr.bf16.mxu1 %v3221_v25  ;;  %3184 = vrsqrt.f32 %v4055_v19  ;;  %vm1032_vm2 = vcmp.eq.f32.partialorder %v4055_v19, inf  ;;  %v1035_v57 = vand.u32 2147483648, %v4055_v19  ;;  %v3157_v21 = vld [vmem:[%s4228_s3 + $0x20] sm:$0xff]  }
 0x106   :  { %v898_v23 = vpop.f32.mrf.mxu0  ;;  %vm1034_vm4 = vcmp.eq.f32.partialorder %v4055_v19, 0.0 }
 0x107   :  { %2755 = vmatpush3.bf16.msra.mxu0 %v3149_v20  ;;  %3186 = vrsqrt.f32 %v4063_v22  ;;  %vm1039_vm3 = vcmp.eq.f32.partialorder %v4063_v22, inf  ;;  %v1042_v61 = vand.u32 2147483648, %v4063_v22  ;;  %vm1041_vm5 = vcmp.eq.f32.partialorder %v4063_v22, 0.0  ;;  %v3156_v20 = vld [vmem:[%s4228_s3 + $0x60] sm:$0xff]   ;;  %v3161_v23 = vld [vmem:[%s4228_s3 + $0x50] sm:$0xff]  }
 0x108   :  { %v899_v24 = vpop.f32.mrf.mxu0  ;;  %2762 = vmatprep.subr.bf16.mxu0 %v3150_v9  ;;  %2145 = vmatpush1.bf16.msra.mxu1 %v3173_v33  ;;  %v3158_v9 = vld [vmem:[%s4228_s3 + $0x58] sm:$0xff]  }
 0x109   :  { %2160 = vmatprep.subr.bf16.mxu1 %v3221_v25  ;;  %v3163_v24 = vld [vmem:[%s4228_s3 + $0x10] sm:$0xff]  }
 0x10c   :  { %2161 = vmatpush2.bf16.msra.mxu1 %v3174_v34  ;;  %v1025_v34 = vld [vmem:[%s4230_s5 + $0x8] sm:$0xff] }
 0x10d   :  { %2372 = vmatprep.subr.bf16.mxu1 %v3221_v25 }
 0x112   :  { %v3185_v46 = vpop.eup %3184 }
 0x113   :  { %v1031_v49 = vmul.f32 %v3185_v46, %v4055_v19 }
 0x114   :  { %v3187_v47 = vpop.eup %3186 }
 0x115   :  { %v1038_v52 = vmul.f32 %v3187_v47, %v4063_v22  ;;  %v1033_v55 = vsel %vm1032_vm2, %v4055_v19, %v1031_v49  ;;  %v3155_v19 = vld [vmem:[%s4228_s3 + $0x28] sm:$0xff]  }
 0x116   :  { %v1036_v60 = vsel %vm1034_vm4, %v1035_v57, %v1033_v55 }
 0x117   :  { %v1040_v59 = vsel %vm1039_vm3, %v4063_v22, %v1038_v52  ;;  %v1058_v2 = vmul.f32 %v1036_v60, %v1026_v58  ;;  %v3160_v22 = vld [vmem:[%s4228_s3 + $0x18] sm:$0xff]  }
 0x118   :  { %v1043_v1 = vsel %vm1041_vm5, %v1042_v61, %v1040_v59 }
 0x119   :  { %v1059_v4 = vmul.f32 %v1043_v1, %v1027_v63 }
 0x136   :  { %v1017_v36 = vpop.f32.mrf.mxu0 }
 0x137   :  { %v976_v35 = vpop.f32.mrf.mxu1 }
 0x138   :  { %v4102_v37 = vadd.f32 %v1017_v36, %v976_v35  ;;  %v1019_v39 = vpop.f32.mrf.mxu0 }
 0x139   :  { %v978_v38 = vpop.f32.mrf.mxu1 }
 0x13a   :  { %v4104_v41 = vadd.f32 %v1019_v39, %v978_v38  ;;  %v1021_v43 = vpop.f32.mrf.mxu0  ;;  %3188 = vrsqrt.f32 %v4102_v37  ;;  %vm1046_vm6 = vcmp.eq.f32.partialorder %v4102_v37, inf  ;;  %v1049_v36 = vand.u32 2147483648, %v4102_v37 }
 0x13b   :  { %v980_v42 = vpop.f32.mrf.mxu1  ;;  %v1028_v38 = vunpack.c.l.bf16 %v1025_v34  ;;  %vm1048_vm8 = vcmp.eq.f32.partialorder %v4102_v37, 0.0 }
 0x13c   :  { %v1022_v45 = vpop.f32.mrf.mxu0  ;;  %3190 = vrsqrt.f32 %v4104_v41  ;;  %vm1053_vm7 = vcmp.eq.f32.partialorder %v4104_v41, inf  ;;  %v1056_v43 = vand.u32 2147483648, %v4104_v41  ;;  %vm1055_vm9 = vcmp.eq.f32.partialorder %v4104_v41, 0.0 }
 0x13d   :  { %v981_v44 = vpop.f32.mrf.mxu1 }
 0x13e   :  { %v1029_v44 = vunpack.c.h.bf16 %v1025_v34 }
 0x147   :  { %v3189_v29 = vpop.eup %3188 }
 0x148   :  { %v1045_v32 = vmul.f32 %v3189_v29, %v4102_v37 }
 0x149   :  { %v3191_v31 = vpop.eup %3190 }
 0x14a   :  { %v1052_v33 = vmul.f32 %v3191_v31, %v4104_v41  ;;  %v1047_v35 = vsel %vm1046_vm6, %v4102_v37, %v1045_v32 }
 0x14b   :  { %v1050_v42 = vsel %vm1048_vm8, %v1049_v36, %v1047_v35 }
 0x14c   :  { %v1054_v39 = vsel %vm1053_vm7, %v4104_v41, %v1052_v33  ;;  %v1060_v46 = vmul.f32 %v1050_v42, %v1028_v38 }
 0x14d   :  { %v1057_v45 = vsel %vm1055_vm9, %v1056_v43, %v1054_v39 }
 0x16b   :  { %v1735_v48 = vpop.f32.mrf.mxu1 }
 0x16d   :  { %v1737_v50 = vpop.f32.mrf.mxu1 }
 0x16f   :  { %v1739_v53 = vpop.f32.mrf.mxu1 }
 0x171   :  { %v1740_v56 = vpop.f32.mrf.mxu1 }
 0x176   :  { %v1694_v3 = vpop.f32.mrf.mxu0 }
 0x177   :  { %v1695_v40 = vadd.f32 %v1694_v3, %v1058_v2  ;;  %v3175_v2 = vld [vmem:[%s4228_s3 + $0xb8] sm:$0xff]  }
 0x178   :  { %v1696_v5 = vpop.f32.mrf.mxu0 }
 0x179   :  { %v1736_v6 = vadd.f32 %v1735_v48, %v1695_v40  ;;  %v1697_v0 = vadd.f32 %v1696_v5, %v1059_v4  ;;  %v3176_v40 = vld [vmem:[%s4228_s3 + $0xb0] sm:$0xff]   ;;  %v3177_v4 = vld [vmem:[%s4228_s3 + $0xa8] sm:$0xff]   ;;  %v3178_v5 = vld [vmem:[%s4228_s3 + $0xa0] sm:$0xff]  }
 0x17a   :  { %v1698_v7 = vpop.f32.mrf.mxu0 }
 0x17b   :  { %v1824_v8 = vmax.f32 %v1736_v6, 0.0  ;;  %v1738_v12 = vadd.f32 %v1737_v50, %v1697_v0  ;;  %v1061_v50 = vmul.f32 %v1057_v45, %v1029_v44  ;;  %v3179_v6 = vld [vmem:[%s4228_s3 + $0x98] sm:$0xff]   ;;  %v3180_v0 = vld [vmem:[%s4228_s3 + $0x90] sm:$0xff]   ;;  %v3181_v7 = vld [vmem:[%s4228_s3 + $0x88] sm:$0xff]  }
 0x17c   :  { %v1699_v13 = vpop.f32.mrf.mxu0 }
 0x17d   :  { %v1825_v10 = vmax.f32 %v1738_v12, 0.0  ;;  %v1828_v51 = vpack.c.bf16 %v1824_v8, %v1824_v8  ;;  %v3182_v8 = vld [vmem:[%s4228_s3 + $0x80] sm:$0xff]  }
 0x17e   :  { %v3183_v12 = vld [vmem:[%s4228_s3 + $0xc0] sm:$0xff]  }
 0x17f   :  { %v1829_v62 = vpack.c.bf16 %v1825_v10, %v1825_v10  ;;  %v1832_v15 = vmul.bf16 %v1828_v51, %v1828_v51 }
 0x181   :  { %v1833_v11 = vmul.bf16 %v1829_v62, %v1829_v62 }
 0x183   :  { %2122 = vmatprep.mubr.bf16.mxu0 %v1833_v11 }
 0x184   :  { %2123 = vmatmul.mubr.bf16.vlgmr.msra.gmra.mxu0 %v1832_v15 }
 0x185   :  { %2763 = vmatpush3.bf16.msra.mxu0 %v3151_v14  ;;  %2364 = vmatprep.mubr.bf16.mxu0 %v1829_v62 }
 0x186   :  { %2764 = vmatprep.subr.bf16.mxu0 %v3152_v16 }
 0x189   :  { %2765 = vmatpush3.bf16.msra.mxu0 %v3153_v17 }
 0x18a   :  { %2766 = vmatprep.subr.bf16.mxu0 %v3154_v18 }
 0x18d   :  { %2767 = vmatpush3.bf16.msra.mxu0 %v3155_v19 }
 0x18e   :  { %2768 = vmatprep.subr.bf16.mxu0 %v3156_v20 }
 0x191   :  { %2769 = vmatpush3.bf16.msra.mxu0 %v3157_v21 }
 0x192   :  { %2770 = vmatprep.subr.bf16.mxu0 %v3158_v9 }
 0x195   :  { %2771 = vmatpush3.bf16.msra.mxu0 %v3160_v22 }
 0x196   :  { %2772 = vmatprep.subr.bf16.mxu0 %v3161_v23 }
 0x199   :  { %2773 = vmatpush3.bf16.msra.mxu0 %v3163_v24 }
 0x19a   :  { %2774 = vmatprep.subr.bf16.mxu0 %v3164_v26  ;;  %v2170_v26 = vld [vmem:[%s4231_s6] sm:$0xff]  ;;  %s3222_s6 = smov [#allocation2]  }
 0x19b   :  { %s2432_s2 = sshll.u32 %s3222_s6, 4  ;;  %s2433_s2 = int_to_ptr.vmem [resolvable:$true] %s2432_s2 }
 0x19c   :  { %s3199_s11 = scalar_lea.vmem %s2433_s2, 128  ;;  %p3204_p1 = scmp.lt.s32.totalorder %s2433_s2, %s2433_s2 }
 0x19d   :  { %2775 = vmatpush3.bf16.msra.mxu0 %v3166_v27  ;;  %p3200_p0 = scmp.ne.s32.totalorder %s2433_s2, %s3199_s11  ;;  %p3205_p2 = scmp.lt.s32.totalorder %s3199_s11, %s3199_s11 }
 0x19e   :  { %2776 = vmatprep.subr.bf16.mxu0 %v3167_v28 }
 0x19f   :  { %p3206_p3 = por %p3205_p2, %p3204_p1 }
 0x1a1   :  { %2777 = vmatpush3.bf16.msra.mxu0 %v3169_v30  ;;  %p3207_p4 = pnand %p3206_p3, %p3200_p0 }
 0x1a4   :  { %2365 = vmatmul.mubr.bf16.vlgmr.msra.gmra.mxu0 %v1828_v51 }
 0x1aa   :  { %v1817_v48 = vpop.f32.mrf.mxu0 }
 0x1ab   :  { %v1776_v47 = vpop.f32.mrf.mxu1 }
 0x1ac   :  { %v1777_v49 = vadd.f32 %v1776_v47, %v1060_v46  ;;  %v1819_v53 = vpop.f32.mrf.mxu0 }
 0x1ad   :  { %v1778_v52 = vpop.f32.mrf.mxu1 }
 0x1ae   :  { %v1818_v54 = vadd.f32 %v1817_v48, %v1777_v49  ;;  %v1779_v55 = vadd.f32 %v1778_v52, %v1061_v50  ;;  %v1821_v37 = vpop.f32.mrf.mxu0 }
 0x1af   :  { %v1780_v56 = vpop.f32.mrf.mxu1 }
 0x1b0   :  { %v1826_v57 = vmax.f32 %v1818_v54, 0.0  ;;  %v1820_v58 = vadd.f32 %v1819_v53, %v1779_v55  ;;  %v1822_v60 = vpop.f32.mrf.mxu0 }
 0x1b1   :  { %v1781_v59 = vpop.f32.mrf.mxu1 }
 0x1b2   :  { %v1827_v61 = vmax.f32 %v1820_v58, 0.0  ;;  %v1830_v63 = vpack.c.bf16 %v1826_v57, %v1826_v57 }
 0x1b4   :  { %v1831_v1 = vpack.c.bf16 %v1827_v61, %v1827_v61  ;;  %v1834_v3 = vmul.bf16 %v1830_v63, %v1830_v63 }
 0x1b6   :  { %v1835_v41 = vmul.bf16 %v1831_v1, %v1831_v1 }
 0x1b8   :  { %2713 = vmatprep.mubr.msk.bf16.mxu1 %vm2086_vm10, %v1835_v41 }
 0x1b9   :  { %2163 = vmatmul.mubr.bf16.vlgmr.msra.gmra.mxu1 %v1834_v3 }
 0x1ba   :  { %2373 = vmatpush1.bf16.msra.mxu1 %v3175_v2  ;;  %2739 = vmatprep.mubr.msk.bf16.mxu1 %vm2086_vm10, %v1831_v1 }
 0x1bb   :  { %2374 = vmatprep.subr.bf16.mxu1 %v3221_v25 }
 0x1be   :  { %2375 = vmatpush1.bf16.msra.mxu1 %v3176_v40 }
 0x1bf   :  { %2376 = vmatprep.subr.bf16.mxu1 %v3221_v25 }
 0x1c2   :  { %2377 = vmatpush1.bf16.msra.mxu1 %v3177_v4 }
 0x1c3   :  { %2378 = vmatprep.subr.bf16.mxu1 %v3221_v25 }
 0x1c6   :  { %2379 = vmatpush1.bf16.msra.mxu1 %v3178_v5 }
 0x1c7   :  { %2380 = vmatprep.subr.bf16.mxu1 %v3221_v25 }
 0x1ca   :  { %2381 = vmatpush1.bf16.msra.mxu1 %v3179_v6 }
 0x1cb   :  { %2382 = vmatprep.subr.bf16.mxu1 %v3221_v25 }
 0x1ce   :  { %2383 = vmatpush1.bf16.msra.mxu1 %v3180_v0 }
 0x1cf   :  { %2384 = vmatprep.subr.bf16.mxu1 %v3221_v25 }
 0x1d2   :  { %2385 = vmatpush1.bf16.msra.mxu1 %v3181_v7 }
 0x1d3   :  { %2386 = vmatprep.subr.bf16.mxu1 %v3221_v25 }
 0x1d6   :  { %2387 = vmatpush1.bf16.msra.mxu1 %v3182_v8 }
 0x1d7   :  { %2402 = vmatprep.subr.bf16.mxu1 %v3221_v25 }
 0x1da   :  { %2403 = vmatpush2.bf16.msra.mxu1 %v3183_v12 }
 0x1dd   :  { %2405 = vmatmul.mubr.bf16.vlgmr.msra.gmra.mxu1 %v1830_v63 }
 0x244   :  { %v2756_v13 = vpop.f32.mrf.mxu0 }
 0x246   :  { %v2757_v10 = vpop.f32.mrf.mxu0 }
 0x247   :  { %v2758_v17 = vadd.f32 %v2757_v10, %v2756_v13 }
 0x248   :  { %v2759_v51 = vpop.f32.mrf.mxu0 }
 0x24a   :  { %v2760_v62 = vpop.f32.mrf.mxu0 }
 0x264   :  { %v2778_v11 = vpop.f32.mrf.mxu0 }
 0x266   :  { %v2779_v14 = vpop.f32.mrf.mxu0 }
 0x267   :  { %v2780_v29 = vadd.f32 %v2779_v14, %v2778_v11 }
 0x268   :  { %v2781_v15 = vpop.f32.mrf.mxu0 }
 0x26a   :  { %v2782_v16 = vpop.f32.mrf.mxu0 }
 0x279   :  { %v2164_v18 = vpop.f32.mrf.mxu1 }
 0x27a   :  { %v2165_v19 = vadd.f32 %v2758_v17, %v2164_v18 }
 0x27b   :  { %v2166_v20 = vpop.f32.mrf.mxu1 }
 0x27c   :  { %3192 = vrsqrt.f32 %v2165_v19  ;;  %vm2173_vm11 = vcmp.eq.f32.partialorder %v2165_v19, inf  ;;  %v2176_v24 = vand.u32 2147483648, %v2165_v19  ;;  %vm2175_vm12 = vcmp.eq.f32.partialorder %v2165_v19, 0.0 }
 0x27d   :  { %v2167_v21 = vpop.f32.mrf.mxu1 }
 0x27f   :  { %v2168_v9 = vpop.f32.mrf.mxu1 }
 0x289   :  { %v3193_v22 = vpop.eup %3192 }
 0x28a   :  { %v2172_v23 = vmul.f32 %v3193_v22, %v2165_v19 }
 0x28c   :  { %v2174_v25 = vsel %vm2173_vm11, %v2165_v19, %v2172_v23 }
 0x28d   :  { %v2177_v27 = vsel %vm2175_vm12, %v2176_v24, %v2174_v25 }
 0x28e   :  { %v2178_v28 = vmul.f32 %v2177_v27, %v2170_v26 }
 0x290   :  { %v2367_v30 = vadd.f32 %v2780_v29, %v2178_v28 }
 0x29d   :  { %v2406_v31 = vpop.f32.mrf.mxu1 }
 0x29e   :  { %v2407_v32 = vadd.f32 %v2406_v31, %v2367_v30 }
 0x29f   :  { %v2408_v33 = vpop.f32.mrf.mxu1 }
 0x2a0   :  { %v2412_v34 = vmax.f32 %v2407_v32, 0.0 }
 0x2a1   :  { %v2409_v35 = vpop.f32.mrf.mxu1 }
 0x2a2   :  { %v2414_v36 = vsel %vm2413_vm13, %v2412_v34, -inf }
 0x2a3   :  { %v2410_v38 = vpop.f32.mrf.mxu1  ;;  %2415 = vmax.xlane.f32.xlu0 %v2414_v36 }
 0x32c   :  { %v2416_v39 = vpop.xlane.xlu0 %2415 }
 0x32d   :  { %v2417_v42 = vsub.f32 %v2412_v34, %v2416_v39 }
 0x32f   :  { %v2418_v43 = vmul.f32 1.442695, %v2417_v42 }
 0x331   :  { %3194 = vpow2.f32 %v2418_v43 }
 0x33e   :  { %v3195_v44 = vpop.eup %3194 }
 0x33f   :  { %v2420_v45 = vsel %vm2413_vm13, %v3195_v44, 0.0 }
 0x340   :  { %2421 = vadd.xlane.f32.xlu0 %v2420_v45 }
 0x3c9   :  { %v2422_v46 = vpop.xlane.xlu0 %2421 }
 0x3ca   :  { %3196 = vrcp.f32 %v2422_v46 }
 0x3d7   :  { %v3197_v47 = vpop.eup %3196 }
 0x3d8   :  { %v2424_v48 = vmul.f32 %v3197_v47, %v3195_v44 }
 0x3da   :  { %2425 = vst.msk [vmem:[#allocation2] sm:$0xff] %vm2413_vm13, %v2424_v48 }
 0x3db   :  { %3210 = shalt.err (!%p3207_p4)
}
 0x3dc   :  { %2435 = dma.vmem_to_hbm [thread:$0]  %s2433_s2, 128, %s4232_s7, [#allocation3]  }
 0x3dd   :  { %3219 = dma.done.wait [#allocation3], 128  }
 0x3de   :  { %3220 = vsyncadd [#allocation3], 4294967168 }
 0x3df   :  { %2439 = vsyncpa [#allocation3], 1 }

</bundles_post_ra>
